<compile_context>
chip_gen: v7x
topology: tpu7x:2x2x1
jax: 0.10.0
libtpu: 0.0.40
codegen_flags: <defaults>
</compile_context>

<pallas_src>
import functools

import numpy as np
import jax
import jax.numpy as jnp
from jax import lax
from jax.experimental import pallas as pl
from jax.experimental.pallas import tpu as pltpu

EPS = 1e-5      # nn.BatchNorm default eps
LANES = 128     # one vreg of lanes


def _full_spec(shape):
    """Whole-array block (grid=(1,)) -> satisfies TPU tiling via full-dim rule."""
    nd = len(shape)
    return pl.BlockSpec(shape, lambda *_: (0,) * nd)


# ----------------------- wrapper-side weight re-layouts --------------------- #
def _conv_mats_layer1(w1, *, Wp, Cin, C1, K1, PW1, stride):
    """(K1, Wp*Cin, 256) matrices: taps + stride + horizontal pool parity."""
    qq, kk, pp, cc, jj = np.meshgrid(np.arange(2), np.arange(C1), np.arange(PW1),
                                     np.arange(Cin), np.arange(K1), indexing="ij")
    rows = ((2 * pp + qq) * stride + jj) * Cin + cc            # input lane
    cols = qq * LANES + kk * PW1 + pp                          # output lane (e|o)
    mats = []
    for i in range(K1):
        vals = w1[kk.ravel(), cc.ravel(), i, jj.ravel()].astype(jnp.float32)
        m = jnp.zeros((Wp * Cin, 2 * LANES), jnp.float32)
        mats.append(m.at[rows.ravel(), cols.ravel()].set(vals))
    return jnp.stack(mats)


def _conv_mats_layer2(w2, *, C1, PW1, C2, K2, PW2):
    """(K2, 128, 256) matrices reading the compact layer-1 lane layout."""
    qq, k2, pp2, k1, jj = np.meshgrid(np.arange(2), np.arange(C2), np.arange(PW2),
                                      np.arange(C1), np.arange(K2), indexing="ij")
    rows = k1 * PW1 + (2 * pp2 + qq + jj)
    cols = qq * LANES + k2 * PW2 + pp2
    mats = []
    for i in range(K2):
        vals = w2[k2.ravel(), k1.ravel(), i, jj.ravel()].astype(jnp.float32)
        m = jnp.zeros((LANES, 2 * LANES), jnp.float32)
        mats.append(m.at[rows.ravel(), cols.ravel()].set(vals))
    return jnp.stack(mats)


def _pool_row_selectors(B, out_rows, in_rows, row_stride):
    """0/1 selectors (2, B*out, B*in): sel[p] picks conv row (2*r+p)*stride."""
    sel = np.zeros((2, B * out_rows, B * in_rows), np.float32)
    for p in range(2):
        for b in range(B):
            for r in range(out_rows):
                sel[p, b * out_rows + r,
                    b * in_rows + (2 * r + p) * row_stride] = 1.0
    return jnp.asarray(sel)


def _bn_lane_params(gamma, beta, bias, C, PW):
    """Per-channel projector (128,128) + gamma/beta/bias expanded to lanes."""
    lane = np.arange(LANES)
    valid = lane < C * PW
    ch = np.where(valid, lane // PW, -1)
    proj = ((ch[:, None] == ch[None, :]) &
            valid[:, None] & valid[None, :]).astype(np.float32)
    vl = np.nonzero(valid)[0]
    ch_v = vl // PW
    g = jnp.zeros((1, LANES), jnp.float32).at[0, vl].set(gamma[ch_v])
    be = jnp.zeros((1, LANES), jnp.float32).at[0, vl].set(beta[ch_v])
    bi = jnp.zeros((1, LANES), jnp.float32).at[0, vl].set(bias[ch_v])
    return jnp.asarray(proj), g, be, bi


def _fc1_stack(wf1, *, C2, PH2, PW2, HID):
    """(PH2, 128, HID): FC1 rows re-indexed from PyTorch (C,H,W) flatten order."""
    stack = jnp.zeros((PH2, LANES, HID), jnp.float32)
    m = np.arange(C2 * PW2)
    k2, pw2 = m // PW2, m % PW2
    for ph in range(PH2):
        f = k2 * (PH2 * PW2) + ph * PW2 + pw2
        stack = stack.at[ph, m, :].set(wf1[f, :].astype(jnp.float32))
    return stack


def _fc_row_selectors(B, PH2):
    sel = np.zeros((PH2, B, B * PH2), np.float32)
    for ph in range(PH2):
        for b in range(B):
            sel[ph, b, b * PH2 + ph] = 1.0
    return jnp.asarray(sel)


# --------------------------- fused forward kernel --------------------------- #
def _make_fused_kernel(*, B, Hp, PH1, PW1, K1, PH2, PW2, K2):
    R1 = B * Hp          # conv-1 row count (rows = b*Hp + h)
    R2 = B * PH1         # pooled-1 / conv-2 row count (rows = b*PH1 + ph)
    n1 = float(B * PH1 * PW1)
    n2 = float(B * PH2 * PW2)
    f32 = jnp.float32

    def kernel(x_ref, w1_ref, sel1_ref, b1_ref, p1_ref, g1_ref, be1_ref,
               w2_ref, sel2_ref, b2_ref, p2_ref, g2_ref, be2_ref,
               selfc_ref, wf1_ref, bf1_ref, gf_ref, bef_ref,
               wf2_ref, bf2_ref,
               out_ref, a1_ref):

        def conv_pool_bn(in_ref, r_lo, r_cnt, K, w_ref, sel_ref, b_ref,
                         proj_ref, g_ref, be_ref, n):
            # conv: K row-shifted lane-dense matmuls; even/odd pool columns in
            # lane halves of the 256-wide result.
            c = jnp.dot(in_ref[r_lo:r_lo + r_cnt, :], w_ref[0],
                        preferred_element_type=f32)
            for i in range(1, K):
                c = c + jnp.dot(in_ref[r_lo + i:r_lo + i + r_cnt, :], w_ref[i],
                                preferred_element_type=f32)
            hmax = jnp.maximum(c[:, 0:LANES], c[:, LANES:2 * LANES])   # horiz 2-max
            ev = jnp.dot(sel_ref[0], hmax, preferred_element_type=f32)  # vert 2-max
            od = jnp.dot(sel_ref[1], hmax, preferred_element_type=f32)
            pooled = jnp.maximum(ev, od) + b_ref[...]
            # BatchNorm2d (batch stats) + ReLU, stats via one projector matmul
            cs = jnp.sum(pooled, axis=0, keepdims=True)
            cq = jnp.sum(pooled * pooled, axis=0, keepdims=True)
            mean = jnp.dot(cs, proj_ref[...], preferred_element_type=f32) * (1.0 / n)
            msq = jnp.dot(cq, proj_ref[...], preferred_element_type=f32) * (1.0 / n)
            scale = g_ref[...] * lax.rsqrt(msq - mean * mean + EPS)
            shift = be_ref[...] - mean * scale
            return jnp.maximum(pooled * scale + shift, 0.0)

        # ---------------- layer 1: conv -> pool -> BN -> ReLU -----------------
        a1 = conv_pool_bn(x_ref, 0, R1, K1, w1_ref, sel1_ref, b1_ref,
                          p1_ref, g1_ref, be1_ref, n1)          # (B*PH1, 128)
        a1_ref[0:R2, :] = a1
        if K2 > 1:                                              # zero halo rows
            a1_ref[R2:R2 + K2 - 1, :] = jnp.zeros((K2 - 1, LANES), f32)

        # ---------------- layer 2: conv -> pool -> BN -> ReLU -----------------
        a2 = conv_pool_bn(a1_ref, 0, R2, K2, w2_ref, sel2_ref, b2_ref,
                          p2_ref, g2_ref, be2_ref, n2)          # (B*PH2, 128)

        # ---------------- FC head: Linear -> ReLU -> BN1d -> Linear -> Softmax
        z1 = bf1_ref[...]                                       # (1, HID)
        for ph in range(PH2):
            rows = jnp.dot(selfc_ref[ph], a2, preferred_element_type=f32)  # (B,128)
            z1 = z1 + jnp.dot(rows, wf1_ref[ph], preferred_element_type=f32)
        r1 = jnp.maximum(z1, 0.0)                               # (B, HID)
        ms = jnp.sum(r1, axis=0, keepdims=True) * (1.0 / B)
        qs = jnp.sum(r1 * r1, axis=0, keepdims=True) * (1.0 / B)
        scf = gf_ref[...] * lax.rsqrt(qs - ms * ms + EPS)
        h1 = r1 * scf + (bef_ref[...] - ms * scf)

        z2 = jnp.dot(h1, wf2_ref[...], preferred_element_type=f32) + bf2_ref[...]
        zmax = jnp.max(z2, axis=1, keepdims=True)
        e = jnp.exp(z2 - zmax)
        esum = jnp.sum(e, axis=1, keepdims=True)
        inv = pl.reciprocal(esum, approx=True)                  # EUP
        inv = inv * (2.0 - esum * inv)                          # one Newton step
        out_ref[...] = e * inv

    return kernel


# ------------------------------- wrapper ----------------------------------- #
def classifier_cnn_forward(x_nchw, params, *, layer1_stride=1, layer1_padding=0):
    f32 = jnp.float32
    x = jnp.transpose(x_nchw, (0, 2, 3, 1)).astype(f32)          # NCHW -> NHWC
    if layer1_padding:
        p = layer1_padding
        x = jnp.pad(x, ((0, 0), (p, p), (p, p), (0, 0)))
    B, Hp, Wp, Cin = x.shape
    s = layer1_stride

    w1, w2 = params["w1"], params["w2"]
    C1, K1 = w1.shape[0], w1.shape[2]
    C2, K2 = w2.shape[0], w2.shape[2]
    OH1, OW1 = (Hp - K1) // s + 1, (Wp - K1) // s + 1
    PH1, PW1 = OH1 // 2, OW1 // 2
    OH2, OW2 = PH1 - K2 + 1, PW1 - K2 + 1
    PH2, PW2 = OH2 // 2, OW2 // 2
    HID = params["wf1"].shape[1]
    OUT = params["wf2"].shape[1]

    assert C1 * PW1 <= LANES and C2 * PW2 <= LANES, \
        "pooled channels*width must fit one vreg of lanes"
    assert PH1 >= K2 and PH2 >= 1 and PW2 >= 1
    assert params["wf1"].shape[0] == C2 * PH2 * PW2

    # input as a 2-D (rows = b*Hp + h, lanes = w*Cin + c) slab + K1-1 halo rows
    x2d = jnp.pad(x.reshape(B * Hp, Wp * Cin), ((0, K1 - 1), (0, 0)))

    # one-time weight / selector re-layouts (tiny; layout plumbing on XLA side)
    w1m = _conv_mats_layer1(w1, Wp=Wp, Cin=Cin, C1=C1, K1=K1, PW1=PW1, stride=s)
    w2m = _conv_mats_layer2(w2, C1=C1, PW1=PW1, C2=C2, K2=K2, PW2=PW2)
    sel1 = _pool_row_selectors(B, PH1, Hp, s)
    sel2 = _pool_row_selectors(B, PH2, PH1, 1)
    p1, g1, be1, b1 = _bn_lane_params(params["gamma1"], params["beta1"],
                                      params["b1"], C1, PW1)
    p2, g2, be2, b2 = _bn_lane_params(params["gamma2"], params["beta2"],
                                      params["b2"], C2, PW2)
    selfc = _fc_row_selectors(B, PH2)
    wf1s = _fc1_stack(params["wf1"], C2=C2, PH2=PH2, PW2=PW2, HID=HID)

    args = [
        x2d, w1m, sel1, b1, p1, g1, be1,
        w2m, sel2, b2, p2, g2, be2,
        selfc, wf1s,
        params["bf1"].reshape(1, HID).astype(f32),
        params["gammaf"].reshape(1, HID).astype(f32),
        params["betaf"].reshape(1, HID).astype(f32),
        params["wf2"].astype(f32),
        params["bf2"].reshape(1, OUT).astype(f32),
    ]

    kernel = _make_fused_kernel(B=B, Hp=Hp, PH1=PH1, PW1=PW1, K1=K1,
                                PH2=PH2, PW2=PW2, K2=K2)

    out = pl.pallas_call(
        kernel,
        out_shape=jax.ShapeDtypeStruct((B, OUT), f32),
        grid=(1,),
        in_specs=[_full_spec(a.shape) for a in args],
        out_specs=_full_spec((B, OUT)),
        scratch_shapes=[pltpu.VMEM((B * PH1 + K2 - 1, LANES), f32)],
        compiler_params=pltpu.CompilerParams(
            dimension_semantics=("arbitrary",)),
    )(*args)
    return out


# --------------------------- pure-JAX reference ----------------------------- #
def _ref_forward(x, params, *, layer1_stride, layer1_padding):
    def conv(x, w, b, stride, pad):
        y = lax.conv_general_dilated(
            x, w, window_strides=(stride, stride),
            padding=[(pad, pad), (pad, pad)],
            dimension_numbers=("NCHW", "OIHW", "NCHW"))
        return y + b.reshape(1, -1, 1, 1)

    def maxpool(x):
        return lax.reduce_window(x, -jnp.inf, lax.max,
                                 (1, 1, 2, 2), (1, 1, 2, 2), "VALID")

    def bn2d(x, g, b):
        mean = jnp.mean(x, axis=(0, 2, 3), keepdims=True)
        var = jnp.mean((x - mean) ** 2, axis=(0, 2, 3), keepdims=True)
        return (x - mean) * lax.rsqrt(var + EPS) * g.reshape(1, -1, 1, 1) \
            + b.reshape(1, -1, 1, 1)

    x = conv(x, params["w1"], params["b1"], layer1_stride, layer1_padding)
    x = jnp.maximum(bn2d(maxpool(x), params["gamma1"], params["beta1"]), 0.0)
    x = conv(x, params["w2"], params["b2"], 1, 0)
    x = jnp.maximum(bn2d(maxpool(x), params["gamma2"], params["beta2"]), 0.0)
    flat = x.reshape(x.shape[0], -1)                       # (C, H, W) order
    z1 = flat @ params["wf1"] + params["bf1"]
    r1 = jnp.maximum(z1, 0.0)
    mean = jnp.mean(r1, axis=0, keepdims=True)
    var = jnp.mean((r1 - mean) ** 2, axis=0, keepdims=True)
    h1 = (r1 - mean) * lax.rsqrt(var + EPS) * params["gammaf"] + params["betaf"]
    z2 = h1 @ params["wf2"] + params["bf2"]
    return jax.nn.softmax(z2, axis=1)


# ------------------------------------ main ---------------------------------- #
if __name__ == "__main__":
    # ClassifierCNN hyperparameters (small, deterministic).
    input_size = 16
    input_depth = 4
    layer1_stride = 1
    layer1_kernel_size = 3
    layer1_output_channels = 8
    layer1_padding = 0
    output_size = 10
    layer2_output_channels = layer1_output_channels       # module default
    hidden_units = 512                                     # hard-coded in module

    # module size formulas
    l1 = (input_size - layer1_kernel_size + 2 * layer1_padding) // layer1_stride + 1
    l1 = (l1 - 1 - 1) // 2 + 1
    l2 = (l1 - 3) // 1 + 1
    l2 = (l2 - 1 - 1) // 2 + 1
    fc_in = l2 * l2 * layer2_output_channels               # = 32 here

    key = jax.random.PRNGKey(0)
    ks = jax.random.split(key, 8)
    x = jax.random.normal(ks[0], (2, input_depth, input_size, input_size),
                          dtype=jnp.float32)

    params = {
        "w1": 0.2 * jax.random.normal(
            ks[1], (layer1_output_channels, input_depth,
                    layer1_kernel_size, layer1_kernel_size), dtype=jnp.float32),
        "b1": 0.1 * jax.random.normal(ks[2], (layer1_output_channels,),
                                      dtype=jnp.float32),
        "gamma1": jnp.ones((layer1_output_channels,), jnp.float32),
        "beta1": jnp.zeros((layer1_output_channels,), jnp.float32),
        "w2": 0.2 * jax.random.normal(
            ks[3], (layer2_output_channels, layer1_output_channels, 3, 3),
            dtype=jnp.float32),
        "b2": 0.1 * jax.random.normal(ks[4], (layer2_output_channels,),
                                      dtype=jnp.float32),
        "gamma2": jnp.ones((layer2_output_channels,), jnp.float32),
        "beta2": jnp.zeros((layer2_output_channels,), jnp.float32),
        "wf1": 0.1 * jax.random.normal(ks[5], (fc_in, hidden_units),
                                       dtype=jnp.float32),
        "bf1": 0.1 * jax.random.normal(ks[6], (hidden_units,), dtype=jnp.float32),
        "gammaf": jnp.ones((hidden_units,), jnp.float32),
        "betaf": jnp.zeros((hidden_units,), jnp.float32),
        "wf2": 0.1 * jax.random.normal(ks[7], (hidden_units, output_size),
                                       dtype=jnp.float32),
        "bf2": jnp.zeros((output_size,), jnp.float32),
    }

    fwd = jax.jit(functools.partial(classifier_cnn_forward,
                                    layer1_stride=layer1_stride,
                                    layer1_padding=layer1_padding))
    out = jax.block_until_ready(fwd(x, params))

    ref = _ref_forward(x, params, layer1_stride=layer1_stride,
                       layer1_padding=layer1_padding)
    assert out.shape == ref.shape == (2, output_size), out.shape
    max_err = float(jnp.max(jnp.abs(out - ref)))
    assert jnp.allclose(out, ref, atol=5e-4, rtol=5e-4), max_err
    assert jnp.allclose(jnp.sum(out, axis=1), 1.0, atol=1e-4)

    print("KERNEL_OK")
</pallas_src>

<mosaic_0001>
module attributes {stable_mosaic.version = 11 : i64} {
  func.func @kernel(%arg0: i32, %arg1: memref<34x64xf32, #tpu.memory_space<vmem>>, %arg2: memref<3x64x256xf32, #tpu.memory_space<vmem>>, %arg3: memref<2x14x32xf32, #tpu.memory_space<vmem>>, %arg4: memref<1x128xf32, #tpu.memory_space<vmem>>, %arg5: memref<128x128xf32, #tpu.memory_space<vmem>>, %arg6: memref<1x128xf32, #tpu.memory_space<vmem>>, %arg7: memref<1x128xf32, #tpu.memory_space<vmem>>, %arg8: memref<3x128x256xf32, #tpu.memory_space<vmem>>, %arg9: memref<2x4x14xf32, #tpu.memory_space<vmem>>, %arg10: memref<1x128xf32, #tpu.memory_space<vmem>>, %arg11: memref<128x128xf32, #tpu.memory_space<vmem>>, %arg12: memref<1x128xf32, #tpu.memory_space<vmem>>, %arg13: memref<1x128xf32, #tpu.memory_space<vmem>>, %arg14: memref<2x2x4xf32, #tpu.memory_space<vmem>>, %arg15: memref<2x128x512xf32, #tpu.memory_space<vmem>>, %arg16: memref<1x512xf32, #tpu.memory_space<vmem>>, %arg17: memref<1x512xf32, #tpu.memory_space<vmem>>, %arg18: memref<1x512xf32, #tpu.memory_space<vmem>>, %arg19: memref<512x10xf32, #tpu.memory_space<vmem>>, %arg20: memref<1x10xf32, #tpu.memory_space<vmem>>, %arg21: memref<2x10xf32, #tpu.memory_space<vmem>>, %arg22: memref<16x128xf32, #tpu.memory_space<vmem>>) attributes {dimension_semantics = [#tpu.dimension_semantics<arbitrary>], iteration_bounds = array<i64: 1>, scalar_prefetch = 0 : i64, scratch_operands = 1 : i64, tpu.core_type = #tpu.core_type<tc>, window_params = [{pipeline_mode = #tpu.pipeline_mode<synchronous>, transform_indices = @transform_0, window_bounds = array<i64: 34, 64>}, {pipeline_mode = #tpu.pipeline_mode<synchronous>, transform_indices = @transform_1, window_bounds = array<i64: 3, 64, 256>}, {pipeline_mode = #tpu.pipeline_mode<synchronous>, transform_indices = @transform_2, window_bounds = array<i64: 2, 14, 32>}, {pipeline_mode = #tpu.pipeline_mode<synchronous>, transform_indices = @transform_3, window_bounds = array<i64: 1, 128>}, {pipeline_mode = #tpu.pipeline_mode<synchronous>, transform_indices = @transform_4, window_bounds = array<i64: 128, 128>}, {pipeline_mode = #tpu.pipeline_mode<synchronous>, transform_indices = @transform_5, window_bounds = array<i64: 1, 128>}, {pipeline_mode = #tpu.pipeline_mode<synchronous>, transform_indices = @transform_6, window_bounds = array<i64: 1, 128>}, {pipeline_mode = #tpu.pipeline_mode<synchronous>, transform_indices = @transform_7, window_bounds = array<i64: 3, 128, 256>}, {pipeline_mode = #tpu.pipeline_mode<synchronous>, transform_indices = @transform_8, window_bounds = array<i64: 2, 4, 14>}, {pipeline_mode = #tpu.pipeline_mode<synchronous>, transform_indices = @transform_9, window_bounds = array<i64: 1, 128>}, {pipeline_mode = #tpu.pipeline_mode<synchronous>, transform_indices = @transform_10, window_bounds = array<i64: 128, 128>}, {pipeline_mode = #tpu.pipeline_mode<synchronous>, transform_indices = @transform_11, window_bounds = array<i64: 1, 128>}, {pipeline_mode = #tpu.pipeline_mode<synchronous>, transform_indices = @transform_12, window_bounds = array<i64: 1, 128>}, {pipeline_mode = #tpu.pipeline_mode<synchronous>, transform_indices = @transform_13, window_bounds = array<i64: 2, 2, 4>}, {pipeline_mode = #tpu.pipeline_mode<synchronous>, transform_indices = @transform_14, window_bounds = array<i64: 2, 128, 512>}, {pipeline_mode = #tpu.pipeline_mode<synchronous>, transform_indices = @transform_15, window_bounds = array<i64: 1, 512>}, {pipeline_mode = #tpu.pipeline_mode<synchronous>, transform_indices = @transform_16, window_bounds = array<i64: 1, 512>}, {pipeline_mode = #tpu.pipeline_mode<synchronous>, transform_indices = @transform_17, window_bounds = array<i64: 1, 512>}, {pipeline_mode = #tpu.pipeline_mode<synchronous>, transform_indices = @transform_18, window_bounds = array<i64: 512, 10>}, {pipeline_mode = #tpu.pipeline_mode<synchronous>, transform_indices = @transform_19, window_bounds = array<i64: 1, 10>}, {pipeline_mode = #tpu.pipeline_mode<synchronous>, transform_indices = @transform_20, window_bounds = array<i64: 2, 10>}]} {
    %c0 = arith.constant 0 : index
    %c0_0 = arith.constant 0 : index
    %0 = vector.load %arg1[%c0, %c0_0] : memref<34x64xf32, #tpu.memory_space<vmem>>, vector<32x64xf32>
    %c0_1 = arith.constant 0 : index
    %c0_2 = arith.constant 0 : index
    %c0_3 = arith.constant 0 : index
    %1 = vector.load %arg2[%c0_1, %c0_2, %c0_3] : memref<3x64x256xf32, #tpu.memory_space<vmem>>, vector<1x64x256xf32>
    %2 = vector.shape_cast %1 : vector<1x64x256xf32> to vector<64x256xf32>
    %cst = arith.constant dense<0.000000e+00> : vector<32x256xf32>
    %3 = tpu.matmul %0, %2, %cst {dimension_numbers = #tpu.dot_dimension_numbers<[1], [0], [0], [1], [0, 0, 1, 1], [], []>} : vector<32x64xf32>, vector<64x256xf32>, vector<32x256xf32> -> vector<32x256xf32>
    %c1 = arith.constant 1 : index
    %c0_4 = arith.constant 0 : index
    %4 = vector.load %arg1[%c1, %c0_4] : memref<34x64xf32, #tpu.memory_space<vmem>>, vector<32x64xf32>
    %c1_5 = arith.constant 1 : index
    %c0_6 = arith.constant 0 : index
    %c0_7 = arith.constant 0 : index
    %5 = vector.load %arg2[%c1_5, %c0_6, %c0_7] : memref<3x64x256xf32, #tpu.memory_space<vmem>>, vector<1x64x256xf32>
    %6 = vector.shape_cast %5 : vector<1x64x256xf32> to vector<64x256xf32>
    %cst_8 = arith.constant dense<0.000000e+00> : vector<32x256xf32>
    %7 = tpu.matmul %4, %6, %cst_8 {dimension_numbers = #tpu.dot_dimension_numbers<[1], [0], [0], [1], [0, 0, 1, 1], [], []>} : vector<32x64xf32>, vector<64x256xf32>, vector<32x256xf32> -> vector<32x256xf32>
    %8 = arith.addf %3, %7 : vector<32x256xf32>
    %c2 = arith.constant 2 : index
    %c0_9 = arith.constant 0 : index
    %9 = vector.load %arg1[%c2, %c0_9] : memref<34x64xf32, #tpu.memory_space<vmem>>, vector<32x64xf32>
    %c2_10 = arith.constant 2 : index
    %c0_11 = arith.constant 0 : index
    %c0_12 = arith.constant 0 : index
    %10 = vector.load %arg2[%c2_10, %c0_11, %c0_12] : memref<3x64x256xf32, #tpu.memory_space<vmem>>, vector<1x64x256xf32>
    %11 = vector.shape_cast %10 : vector<1x64x256xf32> to vector<64x256xf32>
    %cst_13 = arith.constant dense<0.000000e+00> : vector<32x256xf32>
    %12 = tpu.matmul %9, %11, %cst_13 {dimension_numbers = #tpu.dot_dimension_numbers<[1], [0], [0], [1], [0, 0, 1, 1], [], []>} : vector<32x64xf32>, vector<64x256xf32>, vector<32x256xf32> -> vector<32x256xf32>
    %13 = arith.addf %8, %12 : vector<32x256xf32>
    %14 = vector.extract_strided_slice %13 {offsets = [0, 0], sizes = [32, 128], strides = [1, 1]} : vector<32x256xf32> to vector<32x128xf32>
    %15 = vector.extract_strided_slice %13 {offsets = [0, 128], sizes = [32, 128], strides = [1, 1]} : vector<32x256xf32> to vector<32x128xf32>
    %16 = arith.maximumf %14, %15 : vector<32x128xf32>
    %c0_14 = arith.constant 0 : index
    %c0_15 = arith.constant 0 : index
    %c0_16 = arith.constant 0 : index
    %17 = vector.load %arg3[%c0_14, %c0_15, %c0_16] : memref<2x14x32xf32, #tpu.memory_space<vmem>>, vector<1x14x32xf32>
    %18 = vector.shape_cast %17 : vector<1x14x32xf32> to vector<14x32xf32>
    %cst_17 = arith.constant dense<0.000000e+00> : vector<14x128xf32>
    %19 = tpu.matmul %18, %16, %cst_17 {dimension_numbers = #tpu.dot_dimension_numbers<[1], [0], [0], [1], [0, 0, 1, 1], [], []>} : vector<14x32xf32>, vector<32x128xf32>, vector<14x128xf32> -> vector<14x128xf32>
    %c1_18 = arith.constant 1 : index
    %c0_19 = arith.constant 0 : index
    %c0_20 = arith.constant 0 : index
    %20 = vector.load %arg3[%c1_18, %c0_19, %c0_20] : memref<2x14x32xf32, #tpu.memory_space<vmem>>, vector<1x14x32xf32>
    %21 = vector.shape_cast %20 : vector<1x14x32xf32> to vector<14x32xf32>
    %cst_21 = arith.constant dense<0.000000e+00> : vector<14x128xf32>
    %22 = tpu.matmul %21, %16, %cst_21 {dimension_numbers = #tpu.dot_dimension_numbers<[1], [0], [0], [1], [0, 0, 1, 1], [], []>} : vector<14x32xf32>, vector<32x128xf32>, vector<14x128xf32> -> vector<14x128xf32>
    %23 = arith.maximumf %19, %22 : vector<14x128xf32>
    %c0_22 = arith.constant 0 : index
    %c0_23 = arith.constant 0 : index
    %24 = vector.load %arg4[%c0_22, %c0_23] : memref<1x128xf32, #tpu.memory_space<vmem>>, vector<1x128xf32>
    %25 = vector.broadcast %24 : vector<1x128xf32> to vector<14x128xf32>
    %26 = arith.addf %23, %25 : vector<14x128xf32>
    %cst_24 = arith.constant dense<0.000000e+00> : vector<128xf32>
    %27 = vector.multi_reduction <add>, %26, %cst_24 [0] : vector<14x128xf32> to vector<128xf32>
    %28 = vector.shape_cast %27 : vector<128xf32> to vector<1x128xf32>
    %29 = arith.mulf %26, %26 : vector<14x128xf32>
    %cst_25 = arith.constant dense<0.000000e+00> : vector<128xf32>
    %30 = vector.multi_reduction <add>, %29, %cst_25 [0] : vector<14x128xf32> to vector<128xf32>
    %31 = vector.shape_cast %30 : vector<128xf32> to vector<1x128xf32>
    %c0_26 = arith.constant 0 : index
    %c0_27 = arith.constant 0 : index
    %32 = vector.load %arg5[%c0_26, %c0_27] : memref<128x128xf32, #tpu.memory_space<vmem>>, vector<128x128xf32>
    %cst_28 = arith.constant dense<0.000000e+00> : vector<1x128xf32>
    %33 = tpu.matmul %28, %32, %cst_28 {dimension_numbers = #tpu.dot_dimension_numbers<[1], [0], [0], [1], [0, 0, 1, 1], [], []>} : vector<1x128xf32>, vector<128x128xf32>, vector<1x128xf32> -> vector<1x128xf32>
    %cst_29 = arith.constant 0.0102040814 : f32
    %34 = vector.broadcast %cst_29 : f32 to vector<1x128xf32>
    %35 = arith.mulf %33, %34 : vector<1x128xf32>
    %c0_30 = arith.constant 0 : index
    %c0_31 = arith.constant 0 : index
    %36 = vector.load %arg5[%c0_30, %c0_31] : memref<128x128xf32, #tpu.memory_space<vmem>>, vector<128x128xf32>
    %cst_32 = arith.constant dense<0.000000e+00> : vector<1x128xf32>
    %37 = tpu.matmul %31, %36, %cst_32 {dimension_numbers = #tpu.dot_dimension_numbers<[1], [0], [0], [1], [0, 0, 1, 1], [], []>} : vector<1x128xf32>, vector<128x128xf32>, vector<1x128xf32> -> vector<1x128xf32>
    %cst_33 = arith.constant 0.0102040814 : f32
    %38 = vector.broadcast %cst_33 : f32 to vector<1x128xf32>
    %39 = arith.mulf %37, %38 : vector<1x128xf32>
    %c0_34 = arith.constant 0 : index
    %c0_35 = arith.constant 0 : index
    %40 = vector.load %arg6[%c0_34, %c0_35] : memref<1x128xf32, #tpu.memory_space<vmem>>, vector<1x128xf32>
    %41 = arith.mulf %35, %35 : vector<1x128xf32>
    %42 = arith.subf %39, %41 : vector<1x128xf32>
    %cst_36 = arith.constant 9.99999974E-6 : f32
    %43 = vector.broadcast %cst_36 : f32 to vector<1x128xf32>
    %44 = arith.addf %42, %43 : vector<1x128xf32>
    %45 = math.rsqrt %44 : vector<1x128xf32>
    %46 = arith.mulf %40, %45 : vector<1x128xf32>
    %c0_37 = arith.constant 0 : index
    %c0_38 = arith.constant 0 : index
    %47 = vector.load %arg7[%c0_37, %c0_38] : memref<1x128xf32, #tpu.memory_space<vmem>>, vector<1x128xf32>
    %48 = arith.mulf %35, %46 : vector<1x128xf32>
    %49 = arith.subf %47, %48 : vector<1x128xf32>
    %50 = vector.broadcast %46 : vector<1x128xf32> to vector<14x128xf32>
    %51 = arith.mulf %26, %50 : vector<14x128xf32>
    %52 = vector.broadcast %49 : vector<1x128xf32> to vector<14x128xf32>
    %53 = arith.addf %51, %52 : vector<14x128xf32>
    %cst_39 = arith.constant 0.000000e+00 : f32
    %54 = vector.broadcast %cst_39 : f32 to vector<14x128xf32>
    %55 = arith.maximumf %53, %54 : vector<14x128xf32>
    %c0_40 = arith.constant 0 : index
    %c0_41 = arith.constant 0 : index
    %56 = vector.load %arg22[%c0_40, %c0_41] : memref<16x128xf32, #tpu.memory_space<vmem>>, vector<14x128xf32>
    tpu.vector_store %arg22[%c0_40, %c0_41], %55 {strides = array<i32>} : memref<16x128xf32, #tpu.memory_space<vmem>>, vector<14x128xf32>,
    %cst_42 = arith.constant 0.000000e+00 : f32
    %57 = vector.broadcast %cst_42 : f32 to vector<2x128xf32>
    %c14 = arith.constant 14 : index
    %c0_43 = arith.constant 0 : index
    %58 = vector.load %arg22[%c14, %c0_43] : memref<16x128xf32, #tpu.memory_space<vmem>>, vector<2x128xf32>
    tpu.vector_store %arg22[%c14, %c0_43], %57 {strides = array<i32>} : memref<16x128xf32, #tpu.memory_space<vmem>>, vector<2x128xf32>,
    %c0_44 = arith.constant 0 : index
    %c0_45 = arith.constant 0 : index
    %59 = vector.load %arg22[%c0_44, %c0_45] : memref<16x128xf32, #tpu.memory_space<vmem>>, vector<14x128xf32>
    %c0_46 = arith.constant 0 : index
    %c0_47 = arith.constant 0 : index
    %c0_48 = arith.constant 0 : index
    %60 = vector.load %arg8[%c0_46, %c0_47, %c0_48] : memref<3x128x256xf32, #tpu.memory_space<vmem>>, vector<1x128x256xf32>
    %61 = vector.shape_cast %60 : vector<1x128x256xf32> to vector<128x256xf32>
    %cst_49 = arith.constant dense<0.000000e+00> : vector<14x256xf32>
    %62 = tpu.matmul %59, %61, %cst_49 {dimension_numbers = #tpu.dot_dimension_numbers<[1], [0], [0], [1], [0, 0, 1, 1], [], []>} : vector<14x128xf32>, vector<128x256xf32>, vector<14x256xf32> -> vector<14x256xf32>
    %c1_50 = arith.constant 1 : index
    %c0_51 = arith.constant 0 : index
    %63 = vector.load %arg22[%c1_50, %c0_51] : memref<16x128xf32, #tpu.memory_space<vmem>>, vector<14x128xf32>
    %c1_52 = arith.constant 1 : index
    %c0_53 = arith.constant 0 : index
    %c0_54 = arith.constant 0 : index
    %64 = vector.load %arg8[%c1_52, %c0_53, %c0_54] : memref<3x128x256xf32, #tpu.memory_space<vmem>>, vector<1x128x256xf32>
    %65 = vector.shape_cast %64 : vector<1x128x256xf32> to vector<128x256xf32>
    %cst_55 = arith.constant dense<0.000000e+00> : vector<14x256xf32>
    %66 = tpu.matmul %63, %65, %cst_55 {dimension_numbers = #tpu.dot_dimension_numbers<[1], [0], [0], [1], [0, 0, 1, 1], [], []>} : vector<14x128xf32>, vector<128x256xf32>, vector<14x256xf32> -> vector<14x256xf32>
    %67 = arith.addf %62, %66 : vector<14x256xf32>
    %c2_56 = arith.constant 2 : index
    %c0_57 = arith.constant 0 : index
    %68 = vector.load %arg22[%c2_56, %c0_57] : memref<16x128xf32, #tpu.memory_space<vmem>>, vector<14x128xf32>
    %c2_58 = arith.constant 2 : index
    %c0_59 = arith.constant 0 : index
    %c0_60 = arith.constant 0 : index
    %69 = vector.load %arg8[%c2_58, %c0_59, %c0_60] : memref<3x128x256xf32, #tpu.memory_space<vmem>>, vector<1x128x256xf32>
    %70 = vector.shape_cast %69 : vector<1x128x256xf32> to vector<128x256xf32>
    %cst_61 = arith.constant dense<0.000000e+00> : vector<14x256xf32>
    %71 = tpu.matmul %68, %70, %cst_61 {dimension_numbers = #tpu.dot_dimension_numbers<[1], [0], [0], [1], [0, 0, 1, 1], [], []>} : vector<14x128xf32>, vector<128x256xf32>, vector<14x256xf32> -> vector<14x256xf32>
    %72 = arith.addf %67, %71 : vector<14x256xf32>
    %73 = vector.extract_strided_slice %72 {offsets = [0, 0], sizes = [14, 128], strides = [1, 1]} : vector<14x256xf32> to vector<14x128xf32>
    %74 = vector.extract_strided_slice %72 {offsets = [0, 128], sizes = [14, 128], strides = [1, 1]} : vector<14x256xf32> to vector<14x128xf32>
    %75 = arith.maximumf %73, %74 : vector<14x128xf32>
    %c0_62 = arith.constant 0 : index
    %c0_63 = arith.constant 0 : index
    %c0_64 = arith.constant 0 : index
    %76 = vector.load %arg9[%c0_62, %c0_63, %c0_64] : memref<2x4x14xf32, #tpu.memory_space<vmem>>, vector<1x4x14xf32>
    %77 = vector.shape_cast %76 : vector<1x4x14xf32> to vector<4x14xf32>
    %cst_65 = arith.constant dense<0.000000e+00> : vector<4x128xf32>
    %78 = tpu.matmul %77, %75, %cst_65 {dimension_numbers = #tpu.dot_dimension_numbers<[1], [0], [0], [1], [0, 0, 1, 1], [], []>} : vector<4x14xf32>, vector<14x128xf32>, vector<4x128xf32> -> vector<4x128xf32>
    %c1_66 = arith.constant 1 : index
    %c0_67 = arith.constant 0 : index
    %c0_68 = arith.constant 0 : index
    %79 = vector.load %arg9[%c1_66, %c0_67, %c0_68] : memref<2x4x14xf32, #tpu.memory_space<vmem>>, vector<1x4x14xf32>
    %80 = vector.shape_cast %79 : vector<1x4x14xf32> to vector<4x14xf32>
    %cst_69 = arith.constant dense<0.000000e+00> : vector<4x128xf32>
    %81 = tpu.matmul %80, %75, %cst_69 {dimension_numbers = #tpu.dot_dimension_numbers<[1], [0], [0], [1], [0, 0, 1, 1], [], []>} : vector<4x14xf32>, vector<14x128xf32>, vector<4x128xf32> -> vector<4x128xf32>
    %82 = arith.maximumf %78, %81 : vector<4x128xf32>
    %c0_70 = arith.constant 0 : index
    %c0_71 = arith.constant 0 : index
    %83 = vector.load %arg10[%c0_70, %c0_71] : memref<1x128xf32, #tpu.memory_space<vmem>>, vector<1x128xf32>
    %84 = vector.broadcast %83 : vector<1x128xf32> to vector<4x128xf32>
    %85 = arith.addf %82, %84 : vector<4x128xf32>
    %cst_72 = arith.constant dense<0.000000e+00> : vector<128xf32>
    %86 = vector.multi_reduction <add>, %85, %cst_72 [0] : vector<4x128xf32> to vector<128xf32>
    %87 = vector.shape_cast %86 : vector<128xf32> to vector<1x128xf32>
    %88 = arith.mulf %85, %85 : vector<4x128xf32>
    %cst_73 = arith.constant dense<0.000000e+00> : vector<128xf32>
    %89 = vector.multi_reduction <add>, %88, %cst_73 [0] : vector<4x128xf32> to vector<128xf32>
    %90 = vector.shape_cast %89 : vector<128xf32> to vector<1x128xf32>
    %c0_74 = arith.constant 0 : index
    %c0_75 = arith.constant 0 : index
    %91 = vector.load %arg11[%c0_74, %c0_75] : memref<128x128xf32, #tpu.memory_space<vmem>>, vector<128x128xf32>
    %cst_76 = arith.constant dense<0.000000e+00> : vector<1x128xf32>
    %92 = tpu.matmul %87, %91, %cst_76 {dimension_numbers = #tpu.dot_dimension_numbers<[1], [0], [0], [1], [0, 0, 1, 1], [], []>} : vector<1x128xf32>, vector<128x128xf32>, vector<1x128xf32> -> vector<1x128xf32>
    %cst_77 = arith.constant 1.250000e-01 : f32
    %93 = vector.broadcast %cst_77 : f32 to vector<1x128xf32>
    %94 = arith.mulf %92, %93 : vector<1x128xf32>
    %c0_78 = arith.constant 0 : index
    %c0_79 = arith.constant 0 : index
    %95 = vector.load %arg11[%c0_78, %c0_79] : memref<128x128xf32, #tpu.memory_space<vmem>>, vector<128x128xf32>
    %cst_80 = arith.constant dense<0.000000e+00> : vector<1x128xf32>
    %96 = tpu.matmul %90, %95, %cst_80 {dimension_numbers = #tpu.dot_dimension_numbers<[1], [0], [0], [1], [0, 0, 1, 1], [], []>} : vector<1x128xf32>, vector<128x128xf32>, vector<1x128xf32> -> vector<1x128xf32>
    %cst_81 = arith.constant 1.250000e-01 : f32
    %97 = vector.broadcast %cst_81 : f32 to vector<1x128xf32>
    %98 = arith.mulf %96, %97 : vector<1x128xf32>
    %c0_82 = arith.constant 0 : index
    %c0_83 = arith.constant 0 : index
    %99 = vector.load %arg12[%c0_82, %c0_83] : memref<1x128xf32, #tpu.memory_space<vmem>>, vector<1x128xf32>
    %100 = arith.mulf %94, %94 : vector<1x128xf32>
    %101 = arith.subf %98, %100 : vector<1x128xf32>
    %cst_84 = arith.constant 9.99999974E-6 : f32
    %102 = vector.broadcast %cst_84 : f32 to vector<1x128xf32>
    %103 = arith.addf %101, %102 : vector<1x128xf32>
    %104 = math.rsqrt %103 : vector<1x128xf32>
    %105 = arith.mulf %99, %104 : vector<1x128xf32>
    %c0_85 = arith.constant 0 : index
    %c0_86 = arith.constant 0 : index
    %106 = vector.load %arg13[%c0_85, %c0_86] : memref<1x128xf32, #tpu.memory_space<vmem>>, vector<1x128xf32>
    %107 = arith.mulf %94, %105 : vector<1x128xf32>
    %108 = arith.subf %106, %107 : vector<1x128xf32>
    %109 = vector.broadcast %105 : vector<1x128xf32> to vector<4x128xf32>
    %110 = arith.mulf %85, %109 : vector<4x128xf32>
    %111 = vector.broadcast %108 : vector<1x128xf32> to vector<4x128xf32>
    %112 = arith.addf %110, %111 : vector<4x128xf32>
    %cst_87 = arith.constant 0.000000e+00 : f32
    %113 = vector.broadcast %cst_87 : f32 to vector<4x128xf32>
    %114 = arith.maximumf %112, %113 : vector<4x128xf32>
    %c0_88 = arith.constant 0 : index
    %c0_89 = arith.constant 0 : index
    %115 = vector.load %arg16[%c0_88, %c0_89] : memref<1x512xf32, #tpu.memory_space<vmem>>, vector<1x512xf32>
    %c0_90 = arith.constant 0 : index
    %c0_91 = arith.constant 0 : index
    %c0_92 = arith.constant 0 : index
    %116 = vector.load %arg14[%c0_90, %c0_91, %c0_92] : memref<2x2x4xf32, #tpu.memory_space<vmem>>, vector<1x2x4xf32>
    %117 = vector.shape_cast %116 : vector<1x2x4xf32> to vector<2x4xf32>
    %cst_93 = arith.constant dense<0.000000e+00> : vector<2x128xf32>
    %118 = tpu.matmul %117, %114, %cst_93 {dimension_numbers = #tpu.dot_dimension_numbers<[1], [0], [0], [1], [0, 0, 1, 1], [], []>} : vector<2x4xf32>, vector<4x128xf32>, vector<2x128xf32> -> vector<2x128xf32>
    %c0_94 = arith.constant 0 : index
    %c0_95 = arith.constant 0 : index
    %c0_96 = arith.constant 0 : index
    %119 = vector.load %arg15[%c0_94, %c0_95, %c0_96] : memref<2x128x512xf32, #tpu.memory_space<vmem>>, vector<1x128x512xf32>
    %120 = vector.shape_cast %119 : vector<1x128x512xf32> to vector<128x512xf32>
    %cst_97 = arith.constant dense<0.000000e+00> : vector<2x512xf32>
    %121 = tpu.matmul %118, %120, %cst_97 {dimension_numbers = #tpu.dot_dimension_numbers<[1], [0], [0], [1], [0, 0, 1, 1], [], []>} : vector<2x128xf32>, vector<128x512xf32>, vector<2x512xf32> -> vector<2x512xf32>
    %122 = vector.broadcast %115 : vector<1x512xf32> to vector<2x512xf32>
    %123 = arith.addf %122, %121 : vector<2x512xf32>
    %c1_98 = arith.constant 1 : index
    %c0_99 = arith.constant 0 : index
    %c0_100 = arith.constant 0 : index
    %124 = vector.load %arg14[%c1_98, %c0_99, %c0_100] : memref<2x2x4xf32, #tpu.memory_space<vmem>>, vector<1x2x4xf32>
    %125 = vector.shape_cast %124 : vector<1x2x4xf32> to vector<2x4xf32>
    %cst_101 = arith.constant dense<0.000000e+00> : vector<2x128xf32>
    %126 = tpu.matmul %125, %114, %cst_101 {dimension_numbers = #tpu.dot_dimension_numbers<[1], [0], [0], [1], [0, 0, 1, 1], [], []>} : vector<2x4xf32>, vector<4x128xf32>, vector<2x128xf32> -> vector<2x128xf32>
    %c1_102 = arith.constant 1 : index
    %c0_103 = arith.constant 0 : index
    %c0_104 = arith.constant 0 : index
    %127 = vector.load %arg15[%c1_102, %c0_103, %c0_104] : memref<2x128x512xf32, #tpu.memory_space<vmem>>, vector<1x128x512xf32>
    %128 = vector.shape_cast %127 : vector<1x128x512xf32> to vector<128x512xf32>
    %cst_105 = arith.constant dense<0.000000e+00> : vector<2x512xf32>
    %129 = tpu.matmul %126, %128, %cst_105 {dimension_numbers = #tpu.dot_dimension_numbers<[1], [0], [0], [1], [0, 0, 1, 1], [], []>} : vector<2x128xf32>, vector<128x512xf32>, vector<2x512xf32> -> vector<2x512xf32>
    %130 = arith.addf %123, %129 : vector<2x512xf32>
    %cst_106 = arith.constant 0.000000e+00 : f32
    %131 = vector.broadcast %cst_106 : f32 to vector<2x512xf32>
    %132 = arith.maximumf %130, %131 : vector<2x512xf32>
    %cst_107 = arith.constant dense<0.000000e+00> : vector<512xf32>
    %133 = vector.multi_reduction <add>, %132, %cst_107 [0] : vector<2x512xf32> to vector<512xf32>
    %134 = vector.shape_cast %133 : vector<512xf32> to vector<1x512xf32>
    %cst_108 = arith.constant 5.000000e-01 : f32
    %135 = vector.broadcast %cst_108 : f32 to vector<1x512xf32>
    %136 = arith.mulf %134, %135 : vector<1x512xf32>
    %137 = arith.mulf %132, %132 : vector<2x512xf32>
    %cst_109 = arith.constant dense<0.000000e+00> : vector<512xf32>
    %138 = vector.multi_reduction <add>, %137, %cst_109 [0] : vector<2x512xf32> to vector<512xf32>
    %139 = vector.shape_cast %138 : vector<512xf32> to vector<1x512xf32>
    %cst_110 = arith.constant 5.000000e-01 : f32
    %140 = vector.broadcast %cst_110 : f32 to vector<1x512xf32>
    %141 = arith.mulf %139, %140 : vector<1x512xf32>
    %c0_111 = arith.constant 0 : index
    %c0_112 = arith.constant 0 : index
    %142 = vector.load %arg17[%c0_111, %c0_112] : memref<1x512xf32, #tpu.memory_space<vmem>>, vector<1x512xf32>
    %143 = arith.mulf %136, %136 : vector<1x512xf32>
    %144 = arith.subf %141, %143 : vector<1x512xf32>
    %cst_113 = arith.constant 9.99999974E-6 : f32
    %145 = vector.broadcast %cst_113 : f32 to vector<1x512xf32>
    %146 = arith.addf %144, %145 : vector<1x512xf32>
    %147 = math.rsqrt %146 : vector<1x512xf32>
    %148 = arith.mulf %142, %147 : vector<1x512xf32>
    %149 = vector.broadcast %148 : vector<1x512xf32> to vector<2x512xf32>
    %150 = arith.mulf %132, %149 : vector<2x512xf32>
    %c0_114 = arith.constant 0 : index
    %c0_115 = arith.constant 0 : index
    %151 = vector.load %arg18[%c0_114, %c0_115] : memref<1x512xf32, #tpu.memory_space<vmem>>, vector<1x512xf32>
    %152 = arith.mulf %136, %148 : vector<1x512xf32>
    %153 = arith.subf %151, %152 : vector<1x512xf32>
    %154 = vector.broadcast %153 : vector<1x512xf32> to vector<2x512xf32>
    %155 = arith.addf %150, %154 : vector<2x512xf32>
    %c0_116 = arith.constant 0 : index
    %c0_117 = arith.constant 0 : index
    %156 = vector.load %arg19[%c0_116, %c0_117] : memref<512x10xf32, #tpu.memory_space<vmem>>, vector<512x10xf32>
    %cst_118 = arith.constant dense<0.000000e+00> : vector<2x10xf32>
    %157 = tpu.matmul %155, %156, %cst_118 {dimension_numbers = #tpu.dot_dimension_numbers<[1], [0], [0], [1], [0, 0, 1, 1], [], []>} : vector<2x512xf32>, vector<512x10xf32>, vector<2x10xf32> -> vector<2x10xf32>
    %c0_119 = arith.constant 0 : index
    %c0_120 = arith.constant 0 : index
    %158 = vector.load %arg20[%c0_119, %c0_120] : memref<1x10xf32, #tpu.memory_space<vmem>>, vector<1x10xf32>
    %159 = vector.broadcast %158 : vector<1x10xf32> to vector<2x10xf32>
    %160 = arith.addf %157, %159 : vector<2x10xf32>
    %cst_121 = arith.constant dense<0xFF800000> : vector<2xf32>
    %161 = vector.multi_reduction <maximumf>, %160, %cst_121 [1] : vector<2x10xf32> to vector<2xf32>
    %162 = vector.shape_cast %161 : vector<2xf32> to vector<2x1xf32>
    %163 = vector.broadcast %162 : vector<2x1xf32> to vector<2x10xf32>
    %164 = arith.subf %160, %163 : vector<2x10xf32>
    %165 = math.exp %164 : vector<2x10xf32>
    %cst_122 = arith.constant dense<0.000000e+00> : vector<2xf32>
    %166 = vector.multi_reduction <add>, %165, %cst_122 [1] : vector<2x10xf32> to vector<2xf32>
    %167 = vector.shape_cast %166 : vector<2xf32> to vector<2x1xf32>
    %168 = tpu.reciprocal %167 {approx = true} : vector<2x1xf32> -> vector<2x1xf32>
    %169 = arith.mulf %167, %168 : vector<2x1xf32>
    %cst_123 = arith.constant 2.000000e+00 : f32
    %170 = vector.broadcast %cst_123 : f32 to vector<2x1xf32>
    %171 = arith.subf %170, %169 : vector<2x1xf32>
    %172 = arith.mulf %168, %171 : vector<2x1xf32>
    %173 = vector.broadcast %172 : vector<2x1xf32> to vector<2x10xf32>
    %174 = arith.mulf %165, %173 : vector<2x10xf32>
    %c0_124 = arith.constant 0 : index
    %c0_125 = arith.constant 0 : index
    %175 = vector.load %arg21[%c0_124, %c0_125] : memref<2x10xf32, #tpu.memory_space<vmem>>, vector<2x10xf32>
    tpu.vector_store %arg21[%c0_124, %c0_125], %174 {strides = array<i32>} : memref<2x10xf32, #tpu.memory_space<vmem>>, vector<2x10xf32>,
    return
  }
  func.func @transform_0(%arg0: i32) -> (i32, i32) {
    %c0_i32 = arith.constant 0 : i32
    %c0_i32_0 = arith.constant 0 : i32
    %c0_i32_1 = arith.constant 0 : i32
    return %c0_i32, %c0_i32_0 : i32, i32
  }
  func.func @transform_1(%arg0: i32) -> (i32, i32, i32) {
    %c0_i32 = arith.constant 0 : i32
    %c0_i32_0 = arith.constant 0 : i32
    %c0_i32_1 = arith.constant 0 : i32
    %c0_i32_2 = arith.constant 0 : i32
    return %c0_i32, %c0_i32_0, %c0_i32_1 : i32, i32, i32
  }
  func.func @transform_2(%arg0: i32) -> (i32, i32, i32) {
    %c0_i32 = arith.constant 0 : i32
    %c0_i32_0 = arith.constant 0 : i32
    %c0_i32_1 = arith.constant 0 : i32
    %c0_i32_2 = arith.constant 0 : i32
    return %c0_i32, %c0_i32_0, %c0_i32_1 : i32, i32, i32
  }
  func.func @transform_3(%arg0: i32) -> (i32, i32) {
    %c0_i32 = arith.constant 0 : i32
    %c0_i32_0 = arith.constant 0 : i32
    %c0_i32_1 = arith.constant 0 : i32
    return %c0_i32, %c0_i32_0 : i32, i32
  }
  func.func @transform_4(%arg0: i32) -> (i32, i32) {
    %c0_i32 = arith.constant 0 : i32
    %c0_i32_0 = arith.constant 0 : i32
    %c0_i32_1 = arith.constant 0 : i32
    return %c0_i32, %c0_i32_0 : i32, i32
  }
  func.func @transform_5(%arg0: i32) -> (i32, i32) {
    %c0_i32 = arith.constant 0 : i32
    %c0_i32_0 = arith.constant 0 : i32
    %c0_i32_1 = arith.constant 0 : i32
    return %c0_i32, %c0_i32_0 : i32, i32
  }
  func.func @transform_6(%arg0: i32) -> (i32, i32) {
    %c0_i32 = arith.constant 0 : i32
    %c0_i32_0 = arith.constant 0 : i32
    %c0_i32_1 = arith.constant 0 : i32
    return %c0_i32, %c0_i32_0 : i32, i32
  }
  func.func @transform_7(%arg0: i32) -> (i32, i32, i32) {
    %c0_i32 = arith.constant 0 : i32
    %c0_i32_0 = arith.constant 0 : i32
    %c0_i32_1 = arith.constant 0 : i32
    %c0_i32_2 = arith.constant 0 : i32
    return %c0_i32, %c0_i32_0, %c0_i32_1 : i32, i32, i32
  }
  func.func @transform_8(%arg0: i32) -> (i32, i32, i32) {
    %c0_i32 = arith.constant 0 : i32
    %c0_i32_0 = arith.constant 0 : i32
    %c0_i32_1 = arith.constant 0 : i32
    %c0_i32_2 = arith.constant 0 : i32
    return %c0_i32, %c0_i32_0, %c0_i32_1 : i32, i32, i32
  }
  func.func @transform_9(%arg0: i32) -> (i32, i32) {
    %c0_i32 = arith.constant 0 : i32
    %c0_i32_0 = arith.constant 0 : i32
    %c0_i32_1 = arith.constant 0 : i32
    return %c0_i32, %c0_i32_0 : i32, i32
  }
  func.func @transform_10(%arg0: i32) -> (i32, i32) {
    %c0_i32 = arith.constant 0 : i32
    %c0_i32_0 = arith.constant 0 : i32
    %c0_i32_1 = arith.constant 0 : i32
    return %c0_i32, %c0_i32_0 : i32, i32
  }
  func.func @transform_11(%arg0: i32) -> (i32, i32) {
    %c0_i32 = arith.constant 0 : i32
    %c0_i32_0 = arith.constant 0 : i32
    %c0_i32_1 = arith.constant 0 : i32
    return %c0_i32, %c0_i32_0 : i32, i32
  }
  func.func @transform_12(%arg0: i32) -> (i32, i32) {
    %c0_i32 = arith.constant 0 : i32
    %c0_i32_0 = arith.constant 0 : i32
    %c0_i32_1 = arith.constant 0 : i32
    return %c0_i32, %c0_i32_0 : i32, i32
  }
  func.func @transform_13(%arg0: i32) -> (i32, i32, i32) {
    %c0_i32 = arith.constant 0 : i32
    %c0_i32_0 = arith.constant 0 : i32
    %c0_i32_1 = arith.constant 0 : i32
    %c0_i32_2 = arith.constant 0 : i32
    return %c0_i32, %c0_i32_0, %c0_i32_1 : i32, i32, i32
  }
  func.func @transform_14(%arg0: i32) -> (i32, i32, i32) {
    %c0_i32 = arith.constant 0 : i32
    %c0_i32_0 = arith.constant 0 : i32
    %c0_i32_1 = arith.constant 0 : i32
    %c0_i32_2 = arith.constant 0 : i32
    return %c0_i32, %c0_i32_0, %c0_i32_1 : i32, i32, i32
  }
  func.func @transform_15(%arg0: i32) -> (i32, i32) {
    %c0_i32 = arith.constant 0 : i32
    %c0_i32_0 = arith.constant 0 : i32
    %c0_i32_1 = arith.constant 0 : i32
    return %c0_i32, %c0_i32_0 : i32, i32
  }
  func.func @transform_16(%arg0: i32) -> (i32, i32) {
    %c0_i32 = arith.constant 0 : i32
    %c0_i32_0 = arith.constant 0 : i32
    %c0_i32_1 = arith.constant 0 : i32
    return %c0_i32, %c0_i32_0 : i32, i32
  }
  func.func @transform_17(%arg0: i32) -> (i32, i32) {
    %c0_i32 = arith.constant 0 : i32
    %c0_i32_0 = arith.constant 0 : i32
    %c0_i32_1 = arith.constant 0 : i32
    return %c0_i32, %c0_i32_0 : i32, i32
  }
  func.func @transform_18(%arg0: i32) -> (i32, i32) {
    %c0_i32 = arith.constant 0 : i32
    %c0_i32_0 = arith.constant 0 : i32
    %c0_i32_1 = arith.constant 0 : i32
    return %c0_i32, %c0_i32_0 : i32, i32
  }
  func.func @transform_19(%arg0: i32) -> (i32, i32) {
    %c0_i32 = arith.constant 0 : i32
    %c0_i32_0 = arith.constant 0 : i32
    %c0_i32_1 = arith.constant 0 : i32
    return %c0_i32, %c0_i32_0 : i32, i32
  }
  func.func @transform_20(%arg0: i32) -> (i32, i32) {
    %c0_i32 = arith.constant 0 : i32
    %c0_i32_0 = arith.constant 0 : i32
    %c0_i32_1 = arith.constant 0 : i32
    return %c0_i32, %c0_i32_0 : i32, i32
  }
}

</mosaic_0001>

<bundles_post_ra>
// kernel: classifier_cnn_forward.1
= control target key start
LH: loop header
LB: loop body
LE: loop exit
PB: predicated region body
PF: predicated region fallthrough
CT: control target
= control target key end

     0   :  { %s5159_s0 = inlined_call_operand.vmem [shape: f32[34,64], index: 0, kind: input, shape index: {}]   ;;  %s5160_s1 = inlined_call_operand.vmem [shape: f32[3,64,256], index: 1, kind: input, shape index: {}]   ;;  %s5161_s2 = inlined_call_operand.vmem [shape: f32[2,14,32], index: 2, kind: input, shape index: {}]   ;;  %s5162_s3 = inlined_call_operand.vmem [shape: f32[1,128], index: 3, kind: input, shape index: {}]   ;;  %s5163_s4 = inlined_call_operand.vmem [shape: f32[128,128], index: 4, kind: input, shape index: {}]   ;;  %s5164_s5 = inlined_call_operand.vmem [shape: f32[1,128], index: 5, kind: input, shape index: {}]   ;;  %s5165_s6 = inlined_call_operand.vmem [shape: f32[1,128], index: 6, kind: input, shape index: {}]   ;;  %s5166_s7 = inlined_call_operand.vmem [shape: f32[3,128,256], index: 7, kind: input, shape index: {}]   ;;  %s5167_s8 = inlined_call_operand.vmem [shape: f32[2,4,14], index: 8, kind: input, shape index: {}]   ;;  %s5168_s9 = inlined_call_operand.vmem [shape: f32[1,128], index: 9, kind: input, shape index: {}]   ;;  %s5169_s10 = inlined_call_operand.vmem [shape: f32[128,128], index: 10, kind: input, shape index: {}]   ;;  %s5170_s11 = inlined_call_operand.vmem [shape: f32[1,128], index: 11, kind: input, shape index: {}]   ;;  %s5171_s12 = inlined_call_operand.vmem [shape: f32[1,128], index: 12, kind: input, shape index: {}]   ;;  %s5172_s13 = inlined_call_operand.vmem [shape: f32[2,2,4], index: 13, kind: input, shape index: {}]   ;;  %s5173_s14 = inlined_call_operand.vmem [shape: f32[2,128,512], index: 14, kind: input, shape index: {}]   ;;  %s5174_s15 = inlined_call_operand.vmem [shape: f32[1,512], index: 15, kind: input, shape index: {}]   ;;  %s5175_s16 = inlined_call_operand.vmem [shape: f32[1,512], index: 16, kind: input, shape index: {}]   ;;  %s5176_s17 = inlined_call_operand.vmem [shape: f32[1,512], index: 17, kind: input, shape index: {}]   ;;  %s5177_s18 = inlined_call_operand.vmem [shape: f32[512,10], index: 18, kind: input, shape index: {}]   ;;  %s5178_s19 = inlined_call_operand.vmem [shape: f32[1,10], index: 19, kind: input, shape index: {}]   ;;  %s5179_s20 = inlined_call_operand.hbm [shape: f32[2,10], index: 20, kind: output, shape index: {}]  }
   0x1   :  { %5184 = sst [smem:[#allocation6_spill]] %s5159_s0 }
   0x2   :  { %5185 = sst [smem:[#allocation7_spill]] %s5160_s1 }
   0x3   :  { %5186 = sst [smem:[#allocation8_spill]] %s5161_s2 }
   0x4   :  { %5187 = sst [smem:[#allocation9_spill]] %s5162_s3 }
   0x5   :  { %5188 = sst [smem:[#allocation10_spill]] %s5163_s4 }
   0x6   :  { %s5189_s23 = sld [smem:[#allocation7_spill]]  ;;  %v3644_v7 = vmov 0.0   ;;  %s5190_s25 = sld [smem:[#allocation6_spill]]  ;;  %vm107_vm0 = vcmask 523264  }
   0x7   :  { %184 = vmatprep.mubr.f32.mxu0 %v3644_v7  ;;  %829 = vst [vmem:[#allocation2 + $0xe] sm:$0x3] %v3644_v7 }
   0xc   :  { %v2574_v0 = vld [vmem:[%s5189_s23 + $0x88] sm:$0xff]  ;;  %v2576_v1 = vld [vmem:[%s5189_s23 + $0x98] sm:$0xff]  ;;  %v2573_v2 = vld [vmem:[%s5189_s23 + $0x80] sm:$0xff] }
   0xd   :  { %v3110_v3 = vpack.c.bf16 %v2576_v1, %v2574_v0  ;;  %v2575_v4 = vld [vmem:[%s5189_s23 + $0x90] sm:$0xff]  ;;  %v2578_v5 = vld [vmem:[%s5189_s23 + $0xa8] sm:$0xff]  ;;  %v2580_v6 = vld [vmem:[%s5189_s23 + $0xb8] sm:$0xff] }
   0xe   :  { %v3112_v8 = vpack.c.bf16 %v2575_v4, %v2573_v2  ;;  %v3114_v9 = vpack.c.bf16 %v2580_v6, %v2578_v5  ;;  %v2577_v10 = vld [vmem:[%s5189_s23 + $0xa0] sm:$0xff]  ;;  %v2579_v11 = vld [vmem:[%s5189_s23 + $0xb0] sm:$0xff]  ;;  %v2582_v12 = vld [vmem:[%s5189_s23 + $0xc8] sm:$0xff] }
   0xf   :  { %3111 = vmatprep.subr.bf16.mxu0 %v3110_v3  ;;  %v2584_v13 = vld [vmem:[%s5189_s23 + $0xd8] sm:$0xff]  ;;  %v3116_v14 = vpack.c.bf16 %v2579_v11, %v2577_v10  ;;  %v2581_v16 = vld [vmem:[%s5189_s23 + $0xc0] sm:$0xff]  ;;  %v2583_v17 = vld [vmem:[%s5189_s23 + $0xd0] sm:$0xff] }
  0x10   :  { %3113 = vmatpush1.bf16.msra.mxu0 %v3112_v8  ;;  %v3118_v15 = vpack.c.bf16 %v2584_v13, %v2582_v12  ;;  %v2586_v18 = vld [vmem:[%s5189_s23 + $0xe8] sm:$0xff]  ;;  %v2588_v19 = vld [vmem:[%s5189_s23 + $0xf8] sm:$0xff]  ;;  %v3120_v20 = vpack.c.bf16 %v2583_v17, %v2581_v16  ;;  %v2585_v22 = vld [vmem:[%s5189_s23 + $0xe0] sm:$0xff] }
  0x11   :  { %3115 = vmatprep.subr.bf16.mxu0 %v3114_v9  ;;  %v3122_v21 = vpack.c.bf16 %v2588_v19, %v2586_v18  ;;  %v2587_v23 = vld [vmem:[%s5189_s23 + $0xf0] sm:$0xff]  ;;  %v71_v24 = vld [vmem:[%s5189_s23 + $0x8] sm:$0xff]  ;;  %v73_v25 = vld [vmem:[%s5189_s23 + $0x18] sm:$0xff] }
  0x12   :  { %v3124_v26 = vpack.c.bf16 %v2587_v23, %v2585_v22  ;;  %v3126_v27 = vpack.c.bf16 %v73_v25, %v71_v24  ;;  %v70_v28 = vld [vmem:[%s5189_s23] sm:$0xff]  ;;  %v72_v29 = vld [vmem:[%s5189_s23 + $0x10] sm:$0xff]  ;;  %v75_v30 = vld [vmem:[%s5189_s23 + $0x28] sm:$0xff] }
  0x13   :  { %v77_v31 = vld [vmem:[%s5189_s23 + $0x38] sm:$0xff]  ;;  %v86_v32 = vld [vmem:[%s5190_s25 + $0x1] sm:$0xff]  ;;  %v3128_v33 = vpack.c.bf16 %v72_v29, %v70_v28  ;;  %v76_v36 = vld [vmem:[%s5189_s23 + $0x30] sm:$0xff] }
  0x14   :  { %3117 = vmatpush1.bf16.msra.mxu0 %v3116_v14  ;;  %v3130_v34 = vpack.c.bf16 %v77_v31, %v75_v30  ;;  %v74_v35 = vld [vmem:[%s5189_s23 + $0x20] sm:$0xff]  ;;  %v79_v37 = vld [vmem:[%s5189_s23 + $0x48] sm:$0xff]  ;;  %v81_v38 = vld [vmem:[%s5189_s23 + $0x58] sm:$0xff] }
  0x15   :  { %3119 = vmatprep.subr.bf16.mxu0 %v3118_v15  ;;  %v87_v39 = vld [vmem:[%s5190_s25 + $0x9] sm:$0xff]  ;;  %v3132_v40 = vpack.c.bf16 %v76_v36, %v74_v35 }
  0x18   :  { %3121 = vmatpush1.bf16.msra.mxu0 %v3120_v20 }
  0x19   :  { %3123 = vmatprep.subr.bf16.mxu0 %v3122_v21 }
  0x1c   :  { %3125 = vmatpush1.bf16.msra.mxu0 %v3124_v26 }
  0x1d   :  { %3127 = vmatprep.subr.bf16.mxu0 %v3126_v27 }
  0x1f   :  { %2589 = vmatmul.mubr.msk.f32.vlgmr.msra.gmra.mrb[0].mxu0 %vm107_vm0, %v86_v32 }
  0x20   :  { %3129 = vmatpush1.bf16.msra.mxu0 %v3128_v33  ;;  %190 = vmatprep.mubr.f32.mxu0 %v3644_v7 }
  0x21   :  { %25 = vsyncpa [#allocation4], 0  ;;  %3131 = vmatprep.subr.bf16.mxu0 %v3130_v34  ;;  %v3134_v41 = vpack.c.bf16 %v81_v38, %v79_v37  ;;  %v78_v42 = vld [vmem:[%s5189_s23 + $0x40] sm:$0xff]  ;;  %v80_v43 = vld [vmem:[%s5189_s23 + $0x50] sm:$0xff]  ;;  %s5191_s22 = sld [smem:[#allocation8_spill]]  ;;  %vm446_vm1 = vcmask 261120  }
  0x22   :  { %v83_v44 = vld [vmem:[%s5189_s23 + $0x68] sm:$0xff]  ;;  %v85_v45 = vld [vmem:[%s5189_s23 + $0x78] sm:$0xff]  ;;  %v3136_v47 = vpack.c.bf16 %v80_v43, %v78_v42  ;;  %v82_v49 = vld [vmem:[%s5189_s23 + $0x60] sm:$0xff]  ;;  %s5192_s3 = sld [smem:[#allocation10_spill]]  ;;  %v3645_v26 = vmov 0.0|0.0   ;;  %vm3646_vm2 = vmmov 0  }
  0x23   :  { %2590 = vmatmul.mubr.msk.f32.gmra.mrb[2].mxu0 %vm107_vm0, %v87_v39  ;;  %v88_v46 = vld [vmem:[%s5190_s25 + $0x11] sm:$0xff]  ;;  %v3138_v48 = vpack.c.bf16 %v85_v45, %v83_v44  ;;  %v2598_v51 = vld [vmem:[%s5189_s23 + $0x108] sm:$0xff]  ;;  %v89_v53 = vld [vmem:[%s5190_s25 + $0x19] sm:$0xff]  ;;  %vm623_vm3 = vcmask 1045504   ;;  %vm3647_vm4 = vmmov 1   ;;  %vm1172_vm6 = vcmask 113664  }
  0x24   :  { %3133 = vmatpush1.bf16.msra.mxu0 %v3132_v40  ;;  %196 = vmatprep.mubr.f32.mxu0 %v3644_v7  ;;  %v84_v50 = vld [vmem:[%s5189_s23 + $0x70] sm:$0xff]  ;;  %v2600_v52 = vld [vmem:[%s5189_s23 + $0x118] sm:$0xff]  ;;  %v2597_v56 = vld [vmem:[%s5189_s23 + $0x100] sm:$0xff]  ;;  %vm1333_vm7 = vcmask 1043456   ;;  %vm1533_vm8 = vcmask 31744   ;;  %vm2131_vm9 = vcmask 1041408  }
  0x25   :  { %3135 = vmatprep.subr.bf16.mxu0 %v3134_v41  ;;  %v3140_v54 = vpack.c.bf16 %v84_v50, %v82_v49  ;;  %v3142_v55 = vpack.c.bf16 %v2600_v52, %v2598_v51  ;;  %v2599_v57 = vld [vmem:[%s5189_s23 + $0x110] sm:$0xff]  ;;  %v2602_v58 = vld [vmem:[%s5189_s23 + $0x128] sm:$0xff]  ;;  %v2604_v59 = vld [vmem:[%s5189_s23 + $0x138] sm:$0xff]  ;;  %vm2543_vm10 = vcmask 74752  }
  0x26   :  { %v66_v60 = vld [vmem:[%s5190_s25] sm:$0xff]  ;;  %v3144_v61 = vpack.c.bf16 %v2599_v57, %v2597_v56  ;;  %v3146_v62 = vpack.c.bf16 %v2604_v59, %v2602_v58  ;;  %v2603_v0 = vld [vmem:[%s5189_s23 + $0x130] sm:$0xff]  ;;  %v2606_v1 = vld [vmem:[%s5189_s23 + $0x148] sm:$0xff] }
  0x27   :  { %2591 = vmatmul.mubr.msk.f32.gmra.mrb[4].mxu0 %vm107_vm0, %v88_v46  ;;  %v2601_v63 = vld [vmem:[%s5189_s23 + $0x120] sm:$0xff]  ;;  %v2608_v2 = vld [vmem:[%s5189_s23 + $0x158] sm:$0xff]  ;;  %v67_v3 = vld [vmem:[%s5190_s25 + $0x8] sm:$0xff] }
  0x28   :  { %3137 = vmatpush1.bf16.msra.mxu0 %v3136_v47  ;;  %202 = vmatprep.mubr.f32.mxu0 %v3644_v7  ;;  %v3148_v4 = vpack.c.bf16 %v2603_v0, %v2601_v63  ;;  %v3150_v5 = vpack.c.bf16 %v2608_v2, %v2606_v1  ;;  %v2605_v6 = vld [vmem:[%s5189_s23 + $0x140] sm:$0xff]  ;;  %v2607_v8 = vld [vmem:[%s5189_s23 + $0x150] sm:$0xff]  ;;  %v2610_v9 = vld [vmem:[%s5189_s23 + $0x168] sm:$0xff] }
  0x29   :  { %3139 = vmatprep.subr.bf16.mxu0 %v3138_v48  ;;  %v2612_v10 = vld [vmem:[%s5189_s23 + $0x178] sm:$0xff]  ;;  %v68_v11 = vld [vmem:[%s5190_s25 + $0x10] sm:$0xff]  ;;  %v3152_v12 = vpack.c.bf16 %v2607_v8, %v2605_v6  ;;  %v2609_v14 = vld [vmem:[%s5189_s23 + $0x160] sm:$0xff] }
  0x2a   :  { %v3154_v13 = vpack.c.bf16 %v2612_v10, %v2610_v9  ;;  %v2611_v15 = vld [vmem:[%s5189_s23 + $0x170] sm:$0xff]  ;;  %v69_v16 = vld [vmem:[%s5190_s25 + $0x18] sm:$0xff]  ;;  %v310_v18 = vld [vmem:[%s5190_s25 + $0x2] sm:$0xff] }
  0x2b   :  { %2592 = vmatmul.mubr.msk.f32.gmra.mrb[6].mxu0 %vm107_vm0, %v89_v53  ;;  %v3156_v17 = vpack.c.bf16 %v2611_v15, %v2609_v14  ;;  %v311_v19 = vld [vmem:[%s5190_s25 + $0xa] sm:$0xff]  ;;  %v312_v20 = vld [vmem:[%s5190_s25 + $0x12] sm:$0xff]  ;;  %v313_v21 = vld [vmem:[%s5190_s25 + $0x1a] sm:$0xff] }
  0x2c   :  { %3141 = vmatpush1.bf16.msra.mxu0 %v3140_v54  ;;  %285 = vmatprep.mubr.f32.mxu0 %v3644_v7  ;;  %v444_v22 = vld [vmem:[%s5191_s22] sm:$0xff]  ;;  %v643_v24 = vld [vmem:[%s5192_s3 + $0x8] sm:$0xff]  ;;  %v2619_v42 = vld [vmem:[%s5191_s22 + $0x10] sm:$0xff] }
  0x2d   :  { %3143 = vmatprep.subr.bf16.mxu0 %v3142_v55  ;;  %2932 = vmatprep.mubr.msk.f32.mxu1 %vm446_vm1, %v444_v22  ;;  %v642_v23 = vld [vmem:[%s5192_s3] sm:$0xff]  ;;  %v445_v41 = vld [vmem:[%s5191_s22 + $0x8] sm:$0x3f]  ;;  %v2620_v43 = vld [vmem:[%s5191_s22 + $0x18] sm:$0x3f] }
  0x2e   :  { %v3175_v25 = vpack.c.bf16 %v643_v24, %v642_v23  ;;  %v644_v44 = vld [vmem:[%s5192_s3 + $0x10] sm:$0xff]  ;;  %v645_v45 = vld [vmem:[%s5192_s3 + $0x18] sm:$0xff]  ;;  %v646_v47 = vld [vmem:[%s5192_s3 + $0x20] sm:$0xff] }
  0x2f   :  { %2593 = vmatmul.mubr.msk.f32.vlgmr.msra.gmra.mrb[0].mxu0 %vm107_vm0, %v66_v60  ;;  %v3178_v46 = vpack.c.bf16 %v645_v45, %v644_v44  ;;  %v647_v48 = vld [vmem:[%s5192_s3 + $0x28] sm:$0xff]  ;;  %v648_v50 = vld [vmem:[%s5192_s3 + $0x30] sm:$0xff]  ;;  %v649_v51 = vld [vmem:[%s5192_s3 + $0x38] sm:$0xff] }
  0x30   :  { %3145 = vmatpush1.bf16.msra.mxu0 %v3144_v61  ;;  %291 = vmatprep.mubr.f32.mxu0 %v3644_v7  ;;  %v3181_v49 = vpack.c.bf16 %v647_v48, %v646_v47  ;;  %v3184_v52 = vpack.c.bf16 %v649_v51, %v648_v50  ;;  %v650_v53 = vld [vmem:[%s5192_s3 + $0x40] sm:$0xff]  ;;  %v651_v54 = vld [vmem:[%s5192_s3 + $0x48] sm:$0xff]  ;;  %v652_v56 = vld [vmem:[%s5192_s3 + $0x50] sm:$0xff] }
  0x31   :  { %3147 = vmatprep.subr.bf16.mxu0 %v3146_v62  ;;  %v3187_v55 = vpack.c.bf16 %v651_v54, %v650_v53  ;;  %v653_v57 = vld [vmem:[%s5192_s3 + $0x58] sm:$0xff]  ;;  %v654_v59 = vld [vmem:[%s5192_s3 + $0x60] sm:$0xff]  ;;  %v655_v60 = vld [vmem:[%s5192_s3 + $0x68] sm:$0xff] }
  0x32   :  { %v3190_v58 = vpack.c.bf16 %v653_v57, %v652_v56  ;;  %v3193_v61 = vpack.c.bf16 %v655_v60, %v654_v59  ;;  %v656_v62 = vld [vmem:[%s5192_s3 + $0x70] sm:$0xff]  ;;  %v657_v63 = vld [vmem:[%s5192_s3 + $0x78] sm:$0xff]  ;;  %s5193_s3 = sld [smem:[#allocation9_spill]]  ;;  %v2632_v45 = vld [vmem:[%s5166_s7 + $0x140] sm:$0xff] }
  0x33   :  { %2594 = vmatmul.mubr.msk.f32.gmra.mrb[2].mxu0 %vm107_vm0, %v67_v3  ;;  %v3196_v0 = vpack.c.bf16 %v657_v63, %v656_v62  ;;  %v2637_v48 = vld [vmem:[%s5166_s7 + $0x168] sm:$0xff]  ;;  %v2636_v51 = vld [vmem:[%s5166_s7 + $0x160] sm:$0xff]  ;;  %vm3320_vm5 = vmpackc.low %vm623_vm3, %vm3647_vm4 }
  0x34   :  { %3149 = vmatpush1.bf16.msra.mxu0 %v3148_v4  ;;  %297 = vmatprep.mubr.f32.mxu0 %v3644_v7  ;;  %v2641_v54 = vld [vmem:[%s5166_s7 + $0x188] sm:$0xff]  ;;  %v2640_v57 = vld [vmem:[%s5166_s7 + $0x180] sm:$0xff] }
  0x35   :  { %3151 = vmatprep.subr.bf16.mxu0 %v3150_v5  ;;  %v2645_v60 = vld [vmem:[%s5166_s7 + $0x1a8] sm:$0xff]  ;;  %v2644_v63 = vld [vmem:[%s5166_s7 + $0x1a0] sm:$0xff] }
  0x37   :  { %2595 = vmatmul.mubr.msk.f32.gmra.mrb[4].mxu0 %vm107_vm0, %v68_v11 }
  0x38   :  { %3153 = vmatpush1.bf16.msra.mxu0 %v3152_v12  ;;  %303 = vmatprep.mubr.f32.mxu0 %v3644_v7  ;;  %v2623_v4 = vld [vmem:[%s5193_s3] ss:$0 sm:$0xff] }
  0x39   :  { %3155 = vmatprep.subr.bf16.mxu0 %v3154_v13 }
  0x3b   :  { %2596 = vmatmul.mubr.msk.f32.gmra.mrb[6].mxu0 %vm107_vm0, %v69_v16 }
  0x3c   :  { %3157 = vmatpush1.bf16.msra.mxu0 %v3156_v17  ;;  %407 = vmatprep.mubr.f32.mxu0 %v3644_v7 }
  0x3d   :  { %3198 = vmatprep.subr.bf16.mxu0 %v3645_v26 }
  0x3f   :  { %2613 = vmatmul.mubr.msk.f32.vlgmr.msra.gmra.mrb[0].mxu0 %vm107_vm0, %v310_v18 }
  0x40   :  { %413 = vmatprep.mubr.f32.mxu0 %v3644_v7  ;;  %3200 = vmatpush3.bf16.msra.mxu0 %v3175_v25 }
  0x41   :  { %3201 = vmatprep.subr.bf16.mxu0 %v3645_v26 }
  0x43   :  { %2614 = vmatmul.mubr.msk.f32.gmra.mrb[2].mxu0 %vm107_vm0, %v311_v19 }
  0x44   :  { %419 = vmatprep.mubr.f32.mxu0 %v3644_v7  ;;  %3203 = vmatpush3.bf16.msra.mxu0 %v3178_v46 }
  0x45   :  { %3204 = vmatprep.subr.bf16.mxu0 %v3645_v26 }
  0x47   :  { %2615 = vmatmul.mubr.msk.f32.gmra.mrb[4].mxu0 %vm107_vm0, %v312_v20 }
  0x48   :  { %425 = vmatprep.mubr.f32.mxu0 %v3644_v7  ;;  %3206 = vmatpush3.bf16.msra.mxu0 %v3181_v49 }
  0x49   :  { %3207 = vmatprep.subr.bf16.mxu0 %v3645_v26 }
  0x4b   :  { %2616 = vmatmul.mubr.msk.f32.gmra.mrb[6].mxu0 %vm107_vm0, %v313_v21 }
  0x4c   :  { %3209 = vmatpush3.bf16.msra.mxu0 %v3184_v52  ;;  %3013 = vmatprep.mubr.msk.f32.mxu0 %vm3646_vm2, %v3644_v7 }
  0x4d   :  { %3210 = vmatprep.subr.bf16.mxu0 %v3645_v26 }
  0x50   :  { %3212 = vmatpush3.bf16.msra.mxu0 %v3187_v55 }
  0x51   :  { %3213 = vmatprep.subr.bf16.mxu0 %v3645_v26 }
  0x54   :  { %3215 = vmatpush3.bf16.msra.mxu0 %v3190_v58 }
  0x55   :  { %3216 = vmatprep.subr.bf16.mxu0 %v3645_v26 }
  0x58   :  { %3218 = vmatpush3.bf16.msra.mxu0 %v3193_v61 }
  0x59   :  { %3219 = vmatprep.subr.bf16.mxu0 %v3645_v26 }
  0x5c   :  { %3221 = vmatpush3.bf16.msra.mxu0 %v3196_v0 }
  0x5d   :  { %3318 = vmatprep.subr.bf16.mxu0 %v3645_v26 }
 0x112   :  { %v409_v27 = vpop.f32.mrb[0].mxu0 }
 0x113   :  { %v411_v28 = vpop.f32.mrb[1].mxu0 }
 0x114   :  { %v440_v29 = vmax.f32 %v409_v27, %v411_v28 }
 0x116   :  { %v415_v30 = vpop.f32.mrb[2].mxu0 }
 0x117   :  { %v417_v31 = vpop.f32.mrb[3].mxu0 }
 0x118   :  { %v441_v32 = vmax.f32 %v415_v30, %v417_v31  ;;  %v2625_v30 = vld [vmem:[%s5166_s7 + $0x108] sm:$0xff]  ;;  %v2627_v31 = vld [vmem:[%s5166_s7 + $0x118] sm:$0xff] }
 0x11a   :  { %v3158_v33 = vpack.c.bf16 %v441_v32, %v440_v29  ;;  %v421_v34 = vpop.f32.mrb[4].mxu0  ;;  %v3222_v32 = vpack.c.bf16 %v2627_v31, %v2625_v30  ;;  %v810_v30 = vlaneseq }
 0x11b   :  { %v423_v35 = vpop.f32.mrb[5].mxu0 }
 0x11c   :  { %v442_v36 = vmax.f32 %v421_v34, %v423_v35  ;;  %3159 = vmatprep.subr.bf16.mxu1 %v3158_v33  ;;  %v2626_v34 = vld [vmem:[%s5166_s7 + $0x110] sm:$0xff]  ;;  %v4165_v31 = vshrl.u32 %v810_v30, 7 }
 0x11d   :  { %3161 = vmatpush3.bf16.msra.mxu1 %v3158_v33  ;;  %v862_v30 = vld [vmem:[%s5166_s7 + $0xf0] sm:$0xff] }
 0x11e   :  { %v427_v37 = vpop.f32.mrb[6].mxu0 }
 0x11f   :  { %v429_v38 = vpop.f32.mrb[7].mxu0 }
 0x120   :  { %v443_v39 = vmax.f32 %v427_v37, %v429_v38  ;;  %v2631_v37 = vld [vmem:[%s5166_s7 + $0x138] sm:$0xff] }
 0x122   :  { %v3162_v40 = vpack.c.bf16 %v443_v39, %v442_v36  ;;  %v2629_v36 = vld [vmem:[%s5166_s7 + $0x128] sm:$0xff]  ;;  %v2628_v39 = vld [vmem:[%s5166_s7 + $0x120] sm:$0xff] }
 0x123   :  { %v3226_v38 = vpack.c.bf16 %v2631_v37, %v2629_v36  ;;  %v806_v36 = vld [vmem:[%s5165_s6] sm:$0x1] }
 0x124   :  { %3163 = vmatprep.subr.bf16.mxu1 %v3162_v40 }
 0x125   :  { %3165 = vmatpush3.bf16.msra.mxu1 %v3162_v40 }
 0x126   :  { %3167 = vmatprep.subr.bf16.mxu1 %v3158_v33 }
 0x128   :  { %2933 = vmatmul.mubr.msk.f32.vlgmr.msra.gmra.mrb[0].mxu1 %vm446_vm1, %v445_v41 }
 0x129   :  { %3169 = vmatpush3.bf16.msra.mxu1 %v3158_v33  ;;  %2943 = vmatprep.mubr.msk.f32.mxu1 %vm446_vm1, %v2619_v42  ;;  %v2624_v33 = vld [vmem:[%s5166_s7 + $0x100] sm:$0xff]  ;;  %v2633_v42 = vld [vmem:[%s5166_s7 + $0x148] sm:$0xff] }
 0x12a   :  { %3171 = vmatprep.subr.bf16.mxu1 %v3162_v40  ;;  %v3224_v35 = vpack.c.bf16 %v2626_v34, %v2624_v33  ;;  %v4171_v33 = vsub.s32 0, %v4165_v31 }
 0x12d   :  { %3173 = vmatpush3.bf16.msra.mxu1 %v3162_v40  ;;  %v2630_v40 = vld [vmem:[%s5166_s7 + $0x130] sm:$0xff] }
 0x12e   :  { %3174 = vmatprep.subr.bf16.mxu1 %v3645_v26  ;;  %v3228_v41 = vpack.c.bf16 %v2630_v40, %v2628_v39 }
 0x130   :  { %2944 = vmatmul.mubr.msk.f32.vlgmr.msra.gmra.mrb[2].mxu1 %vm446_vm1, %v2620_v43  ;;  %v2635_v43 = vld [vmem:[%s5166_s7 + $0x158] sm:$0xff] }
 0x131   :  { %3176 = vmatpush3.bf16.msra.mxu1 %v3175_v25  ;;  %2978 = vmatprep.mubr.msk.f32.mxu1 %vm3646_vm2, %v3644_v7  ;;  %v3230_v44 = vpack.c.bf16 %v2635_v43, %v2633_v42 }
 0x132   :  { %3177 = vmatprep.subr.bf16.mxu1 %v3645_v26 }
 0x135   :  { %3179 = vmatpush3.bf16.msra.mxu1 %v3178_v46  ;;  %v2634_v46 = vld [vmem:[%s5166_s7 + $0x150] sm:$0xff] }
 0x136   :  { %3180 = vmatprep.subr.bf16.mxu1 %v3645_v26  ;;  %v3232_v47 = vpack.c.bf16 %v2634_v46, %v2632_v45 }
 0x139   :  { %3182 = vmatpush3.bf16.msra.mxu1 %v3181_v49  ;;  %v2639_v49 = vld [vmem:[%s5166_s7 + $0x178] sm:$0xff] }
 0x13a   :  { %3183 = vmatprep.subr.bf16.mxu1 %v3645_v26  ;;  %v3234_v50 = vpack.c.bf16 %v2639_v49, %v2637_v48  ;;  %v839_v48 = vld [vmem:[%s5166_s7 + $0x38] sm:$0xff] }
 0x13d   :  { %3185 = vmatpush3.bf16.msra.mxu1 %v3184_v52  ;;  %v2638_v52 = vld [vmem:[%s5166_s7 + $0x170] sm:$0xff] }
 0x13e   :  { %3186 = vmatprep.subr.bf16.mxu1 %v3645_v26  ;;  %v3236_v53 = vpack.c.bf16 %v2638_v52, %v2636_v51  ;;  %v836_v51 = vld [vmem:[%s5166_s7 + $0x20] sm:$0xff]  ;;  %v838_v52 = vld [vmem:[%s5166_s7 + $0x30] sm:$0xff] }
 0x141   :  { %3188 = vmatpush3.bf16.msra.mxu1 %v3187_v55  ;;  %v2643_v55 = vld [vmem:[%s5166_s7 + $0x198] sm:$0xff] }
 0x142   :  { %3189 = vmatprep.subr.bf16.mxu1 %v3645_v26  ;;  %v3238_v56 = vpack.c.bf16 %v2643_v55, %v2641_v54  ;;  %v841_v54 = vld [vmem:[%s5166_s7 + $0x48] sm:$0xff]  ;;  %v843_v55 = vld [vmem:[%s5166_s7 + $0x58] sm:$0xff] }
 0x145   :  { %3191 = vmatpush3.bf16.msra.mxu1 %v3190_v58  ;;  %v2642_v58 = vld [vmem:[%s5166_s7 + $0x190] sm:$0xff] }
 0x146   :  { %3192 = vmatprep.subr.bf16.mxu1 %v3645_v26  ;;  %v3240_v59 = vpack.c.bf16 %v2642_v58, %v2640_v57  ;;  %v3262_v57 = vpack.c.bf16 %v843_v55, %v841_v54  ;;  %v840_v58 = vld [vmem:[%s5166_s7 + $0x40] sm:$0xff]  ;;  %v2670_v55 = vld [vmem:[%s5166_s7 + $0x270] sm:$0xff] }
 0x147   :  { %v2668_v54 = vld [vmem:[%s5166_s7 + $0x260] sm:$0xff] }
 0x149   :  { %3194 = vmatpush3.bf16.msra.mxu1 %v3193_v61  ;;  %v2647_v61 = vld [vmem:[%s5166_s7 + $0x1b8] sm:$0xff] }
 0x14a   :  { %3195 = vmatprep.subr.bf16.mxu1 %v3645_v26  ;;  %v3242_v62 = vpack.c.bf16 %v2647_v61, %v2645_v60  ;;  %v845_v61 = vld [vmem:[%s5166_s7 + $0x68] sm:$0xff] }
 0x14d   :  { %3197 = vmatpush3.bf16.msra.mxu1 %v3196_v0  ;;  %v2646_v0 = vld [vmem:[%s5166_s7 + $0x1b0] sm:$0xff] }
 0x14e   :  { %3223 = vmatprep.subr.bf16.mxu1 %v3222_v32  ;;  %v800_v32 = vld [vmem:[%s5164_s5] sm:$0x1] }
 0x1fb   :  { %v2934_v1 = vpop.f32.mrb[0].mxu1 }
 0x1fc   :  { %v519_v2 = vpop.f32.mrb[1].mxu1 }
 0x203   :  { %v2945_v3 = vpop.f32.mrb[2].mxu1 }
 0x204   :  { %v613_v5 = vmax.f32 %v2934_v1, %v2945_v3  ;;  %v603_v6 = vpop.f32.mrb[3].mxu1  ;;  %v3244_v1 = vpack.c.bf16 %v2646_v0, %v2644_v63  ;;  %v2651_v3 = vld [vmem:[%s5166_s7 + $0x1d8] sm:$0xff] }
 0x205   :  { %v612_v8 = vmax.f32 %v519_v2, %v603_v6  ;;  %v2649_v2 = vld [vmem:[%s5166_s7 + $0x1c8] sm:$0xff]  ;;  %v2650_v6 = vld [vmem:[%s5166_s7 + $0x1d0] sm:$0xff] }
 0x206   :  { %v4048_v9 = vadd.f32 %v2623_v4, %v613_v5  ;;  %v2648_v5 = vld [vmem:[%s5166_s7 + $0x1c0] sm:$0xff] }
 0x207   :  { %v4050_v10 = vadd.f32 %v2623_v4, %v612_v8  ;;  %v3246_v4 = vpack.c.bf16 %v2651_v3, %v2649_v2  ;;  %v3248_v8 = vpack.c.bf16 %v2650_v6, %v2648_v5  ;;  %v846_v2 = vld [vmem:[%s5166_s7 + $0x70] sm:$0xff]  ;;  %v849_v3 = vld [vmem:[%s5166_s7 + $0x88] sm:$0xff] }
 0x208   :  { %v624_v11 = vsel %vm623_vm3, %v4048_v9, 0.0  ;;  %v633_v12 = vmul.f32 %v4048_v9, %v4048_v9 }
 0x209   :  { %v625_v13 = vadd.f32 %v624_v11, %v4050_v10  ;;  %v632_v14 = vmul.f32 %v4050_v10, %v4050_v10  ;;  %v2653_v11 = vld [vmem:[%s5166_s7 + $0x1e8] sm:$0xff] }
 0x20a   :  { %v634_v15 = vsel %vm623_vm3, %v633_v12, 0.0  ;;  %v2655_v12 = vld [vmem:[%s5166_s7 + $0x1f8] sm:$0xff] }
 0x20b   :  { %v626_v16 = vrot.slane %v625_v13, 4  ;;  %v635_v17 = vadd.f32 %v634_v15, %v632_v14  ;;  %v3250_v14 = vpack.c.bf16 %v2655_v12, %v2653_v11  ;;  %v2654_v15 = vld [vmem:[%s5166_s7 + $0x1f0] sm:$0xff]  ;;  %v853_v12 = vld [vmem:[%s5166_s7 + $0xa8] sm:$0xff] }
 0x20c   :  { %v850_v11 = vld [vmem:[%s5166_s7 + $0x90] sm:$0xff] }
 0x20d   :  { %v627_v18 = vadd.f32 %v626_v16, %v625_v13  ;;  %v636_v19 = vrot.slane %v635_v17, 4  ;;  %v2652_v13 = vld [vmem:[%s5166_s7 + $0x1e0] sm:$0xff]  ;;  %v833_v16 = vld [vmem:[%s5166_s7 + $0x8] sm:$0xff] }
 0x20f   :  { %v628_v20 = vrot.slane %v627_v18, 2  ;;  %v637_v21 = vadd.f32 %v636_v19, %v635_v17  ;;  %v835_v17 = vld [vmem:[%s5166_s7 + $0x18] sm:$0xff] }
 0x210   :  { %v3254_v19 = vpack.c.bf16 %v835_v17, %v833_v16  ;;  %v852_v16 = vld [vmem:[%s5166_s7 + $0xa0] sm:$0xff]  ;;  %v854_v17 = vld [vmem:[%s5166_s7 + $0xb0] sm:$0xff] }
 0x211   :  { %v638_v22 = vrot.slane %v637_v21, 2  ;;  %v629_v23 = vadd.f32 %v628_v20, %v627_v18  ;;  %v3252_v18 = vpack.c.bf16 %v2654_v15, %v2652_v13  ;;  %v855_v13 = vld [vmem:[%s5166_s7 + $0xb8] sm:$0xff] }
 0x212   :  { %v3274_v15 = vpack.c.bf16 %v855_v13, %v853_v12  ;;  %v2682_v12 = vld [vmem:[%s5166_s7 + $0x2d0] sm:$0xff]  ;;  %v2685_v13 = vld [vmem:[%s5166_s7 + $0x2e8] sm:$0xff] }
 0x213   :  { %v639_v24 = vadd.f32 %v638_v22, %v637_v21  ;;  %v630_v25 = vrot.slane %v629_v23, 1 }
 0x215   :  { %v631_v27 = vadd.f32 %v630_v25, %v629_v23  ;;  %v640_v28 = vrot.slane %v639_v24, 1 }
 0x217   :  { %2979 = vmatmul.mubr.f32.vlgmr.msra.gmra.mrb[4].mxu1 %v631_v27  ;;  %v641_v29 = vadd.f32 %v640_v28, %v639_v24 }
 0x218   :  { %963 = vmatprep.mubr.f32.mxu1 %v3644_v7  ;;  %3225 = vmatpush1.bf16.msra.mxu1 %v3224_v35 }
 0x219   :  { %3014 = vmatmul.mubr.f32.vlgmr.msra.gmra.mrb[8].mxu0 %v641_v29  ;;  %3227 = vmatprep.subr.bf16.mxu1 %v3226_v38 }
 0x21a   :  { %3020 = vmatprep.mubr.msk.f32.mxu0 %vm3646_vm2, %v3644_v7 }
 0x21c   :  { %3229 = vmatpush1.bf16.msra.mxu1 %v3228_v41 }
 0x21d   :  { %3231 = vmatprep.subr.bf16.mxu1 %v3230_v44 }
 0x220   :  { %3233 = vmatpush1.bf16.msra.mxu1 %v3232_v47  ;;  %v832_v47 = vld [vmem:[%s5166_s7] sm:$0xff] }
 0x221   :  { %3235 = vmatprep.subr.bf16.mxu1 %v3234_v50 }
 0x224   :  { %3237 = vmatpush1.bf16.msra.mxu1 %v3236_v53 }
 0x225   :  { %3239 = vmatprep.subr.bf16.mxu1 %v3238_v56  ;;  %v3260_v56 = vpack.c.bf16 %v838_v52, %v836_v51 }
 0x228   :  { %3241 = vmatpush1.bf16.msra.mxu1 %v3240_v59  ;;  %v842_v59 = vld [vmem:[%s5166_s7 + $0x50] sm:$0xff] }
 0x229   :  { %3243 = vmatprep.subr.bf16.mxu1 %v3242_v62  ;;  %v847_v62 = vld [vmem:[%s5166_s7 + $0x78] sm:$0xff]  ;;  %v3264_v63 = vpack.c.bf16 %v842_v59, %v840_v58  ;;  %v3300_v58 = vpack.c.bf16 %v2670_v55, %v2668_v54 }
 0x22a   :  { %v3266_v0 = vpack.c.bf16 %v847_v62, %v845_v61  ;;  %v2674_v61 = vld [vmem:[%s5166_s7 + $0x290] sm:$0xff]  ;;  %v2677_v62 = vld [vmem:[%s5166_s7 + $0x2a8] sm:$0xff]  ;;  %v1364_v54 = vld [vmem:[%s5169_s10 + $0x78] sm:$0xff] }
 0x22c   :  { %3245 = vmatpush1.bf16.msra.mxu1 %v3244_v1  ;;  %v844_v1 = vld [vmem:[%s5166_s7 + $0x60] sm:$0xff] }
 0x22d   :  { %3247 = vmatprep.subr.bf16.mxu1 %v3246_v4  ;;  %v851_v4 = vld [vmem:[%s5166_s7 + $0x98] sm:$0xff]  ;;  %v3268_v5 = vpack.c.bf16 %v846_v2, %v844_v1  ;;  %v2676_v2 = vld [vmem:[%s5166_s7 + $0x2a0] sm:$0xff] }
 0x22e   :  { %v3270_v6 = vpack.c.bf16 %v851_v4, %v849_v3  ;;  %v2678_v3 = vld [vmem:[%s5166_s7 + $0x2b0] sm:$0xff]  ;;  %v2681_v4 = vld [vmem:[%s5166_s7 + $0x2c8] sm:$0xff] }
 0x230   :  { %3249 = vmatpush1.bf16.msra.mxu1 %v3248_v8  ;;  %v848_v8 = vld [vmem:[%s5166_s7 + $0x80] sm:$0xff] }
 0x231   :  { %3251 = vmatprep.subr.bf16.mxu1 %v3250_v14  ;;  %v3272_v14 = vpack.c.bf16 %v850_v11, %v848_v8  ;;  %v2680_v11 = vld [vmem:[%s5166_s7 + $0x2c0] sm:$0xff] }
 0x234   :  { %3253 = vmatpush1.bf16.msra.mxu1 %v3252_v18  ;;  %v857_v18 = vld [vmem:[%s5166_s7 + $0xc8] sm:$0xff] }
 0x235   :  { %3255 = vmatprep.subr.bf16.mxu1 %v3254_v19  ;;  %v859_v19 = vld [vmem:[%s5166_s7 + $0xd8] sm:$0xff] }
 0x2ea   :  { %v724_v20 = vpop.f32.mrb[4].mxu1 }
 0x2eb   :  { %v728_v21 = vmul.f32 0.010204081, %v724_v20  ;;  %v2980_v22 = vpop.f32.mrb[5].mxu1  ;;  %v3276_v20 = vpack.c.bf16 %v854_v17, %v852_v16  ;;  %v2684_v17 = vld [vmem:[%s5166_s7 + $0x2e0] sm:$0xff] }
 0x2ec   :  { %v795_v23 = vpop.f32.mrb[8].mxu0  ;;  %v856_v22 = vld [vmem:[%s5166_s7 + $0xc0] sm:$0xff] }
 0x2ed   :  { %v801_v24 = vmul.f32 %v728_v21, %v728_v21  ;;  %v799_v25 = vmul.f32 0.010204081, %v795_v23  ;;  %v3015_v27 = vpop.f32.mrb[9].mxu0  ;;  %v858_v23 = vld [vmem:[%s5166_s7 + $0xd0] sm:$0xff] }
 0x2ee   :  { %v3280_v27 = vpack.c.bf16 %v858_v23, %v856_v22 }
 0x2ef   :  { %v802_v28 = vsub.f32 %v799_v25, %v801_v24  ;;  %v861_v24 = vld [vmem:[%s5166_s7 + $0xe8] sm:$0xff]  ;;  %v863_v25 = vld [vmem:[%s5166_s7 + $0xf8] sm:$0xff] }
 0x2f1   :  { %v803_v29 = vadd.f32 1e-05, %v802_v28  ;;  %v3282_v28 = vpack.c.bf16 %v863_v25, %v861_v24 }
 0x2f3   :  { %3604 = vrsqrt.f32 %v803_v29  ;;  %v860_v29 = vld [vmem:[%s5166_s7 + $0xe0] sm:$0xff] }
 0x2fd   :  { %v3605_v34 = vpop.eup %3604 }
 0x2fe   :  { %v805_v35 = vmul.f32 %v3605_v34, %v800_v32  ;;  %v2657_v32 = vld [vmem:[%s5166_s7 + $0x208] sm:$0xff]  ;;  %v2659_v34 = vld [vmem:[%s5166_s7 + $0x218] sm:$0xff] }
 0x300   :  { %v807_v37 = vmul.f32 %v805_v35, %v728_v21  ;;  %v813_v38 = vrot.slane %v805_v35, %v4171_v33  ;;  %v3278_v21 = vpack.c.bf16 %v859_v19, %v857_v18  ;;  %v3284_v35 = vpack.c.bf16 %v862_v30, %v860_v29  ;;  %v2686_v18 = vld [vmem:[%s5166_s7 + $0x2f0] sm:$0xff]  ;;  %v1171_v30 = vld [vmem:[%s5167_s8] sm:$0xf] }
 0x301   :  { %v3316_v19 = vpack.c.bf16 %v2686_v18, %v2684_v17  ;;  %v1611_v17 = vld [vmem:[%s5173_s14 + $0x8] sm:$0xff] }
 0x302   :  { %v808_v39 = vsub.f32 %v806_v36, %v807_v37  ;;  %v815_v40 = vmul.f32 %v813_v38, %v4050_v10  ;;  %v816_v41 = vmul.f32 %v813_v38, %v4048_v9  ;;  %v834_v9 = vld [vmem:[%s5166_s7 + $0x10] sm:$0xff]  ;;  %v837_v10 = vld [vmem:[%s5166_s7 + $0x28] sm:$0xff]  ;;  %v3286_v36 = vpack.c.bf16 %v2659_v34, %v2657_v32  ;;  %v2656_v37 = vld [vmem:[%s5166_s7 + $0x200] sm:$0xff] }
 0x303   :  { %v3256_v49 = vpack.c.bf16 %v834_v9, %v832_v47  ;;  %v3258_v50 = vpack.c.bf16 %v839_v48, %v837_v10  ;;  %v2658_v38 = vld [vmem:[%s5166_s7 + $0x210] sm:$0xff]  ;;  %v2665_v47 = vld [vmem:[%s5166_s7 + $0x248] sm:$0xff]  ;;  %v2667_v9 = vld [vmem:[%s5166_s7 + $0x258] sm:$0xff] }
 0x304   :  { %v821_v42 = vrot.slane %v808_v39, %v4171_v33  ;;  %v2661_v39 = vld [vmem:[%s5166_s7 + $0x228] sm:$0xff]  ;;  %v3294_v48 = vpack.c.bf16 %v2667_v9, %v2665_v47  ;;  %v1349_v32 = vld [vmem:[%s5169_s10] sm:$0xff] }
 0x305   :  { %v1350_v34 = vld [vmem:[%s5169_s10 + $0x8] sm:$0xff]  ;;  %v1357_v9 = vld [vmem:[%s5169_s10 + $0x40] sm:$0xff] }
 0x306   :  { %v4180_v43 = vadd.f32 %v821_v42, %v815_v40  ;;  %v824_v44 = vadd.f32 %v821_v42, %v816_v41  ;;  %v2663_v40 = vld [vmem:[%s5166_s7 + $0x238] sm:$0xff]  ;;  %v3288_v41 = vpack.c.bf16 %v2658_v38, %v2656_v37  ;;  %v1351_v37 = vld [vmem:[%s5169_s10 + $0x10] sm:$0xff]  ;;  %v1615_v18 = vld [vmem:[%s5173_s14 + $0x28] sm:$0xff] }
 0x307   :  { %v3290_v42 = vpack.c.bf16 %v2663_v40, %v2661_v39  ;;  %v1352_v38 = vld [vmem:[%s5169_s10 + $0x18] sm:$0xff]  ;;  %v1353_v40 = vld [vmem:[%s5169_s10 + $0x20] sm:$0xff] }
 0x308   :  { %v825_v45 = vmax.f32 %v4180_v43, 0.0  ;;  %v826_v46 = vmax.f32 %v824_v44, 0.0  ;;  %v2660_v44 = vld [vmem:[%s5166_s7 + $0x220] sm:$0xff]  ;;  %v2669_v43 = vld [vmem:[%s5166_s7 + $0x268] sm:$0xff]  ;;  %v3330_v39 = vpack.c.bf16 %v1352_v38, %v1351_v37 }
 0x309   :  { %v1639_v37 = vld [vmem:[%s5173_s14 + $0xe8] sm:$0xff] }
 0x30a   :  { %827 = vst [vmem:[#allocation2] sm:$0xff] %v825_v45  ;;  %828 = vst [vmem:[#allocation2 + $0x8] sm:$0x3f] %v826_v46  ;;  %v2662_v46 = vld [vmem:[%s5166_s7 + $0x230] sm:$0xff] }
 0x30b   :  { %v3292_v10 = vpack.c.bf16 %v2662_v46, %v2660_v44  ;;  %v1355_v44 = vld [vmem:[%s5169_s10 + $0x30] sm:$0xff]  ;;  %v1356_v46 = vld [vmem:[%s5169_s10 + $0x38] sm:$0xff] }
 0x30c   :  { %v3336_v47 = vpack.c.bf16 %v1356_v46, %v1355_v44  ;;  %v1647_v44 = vld [vmem:[%s5173_s14 + $0x128] sm:$0xff] }
 0x311   :  { %v864_v53 = vld [vmem:[#allocation2 + $0x1] sm:$0xff]  ;;  %v865_v60 = vld [vmem:[#allocation2 + $0x9] sm:$0x3f] }
 0x312   :  { %964 = vmatmul.mubr.f32.vlgmr.msra.gmra.mrb[6].mxu1 %v864_v53  ;;  %v831_v51 = vld [vmem:[#allocation2 + $0x8] sm:$0x3f] }
 0x313   :  { %3257 = vmatpush1.bf16.msra.mxu1 %v3256_v49  ;;  %969 = vmatprep.mubr.f32.mxu1 %v3644_v7  ;;  %v2664_v49 = vld [vmem:[%s5166_s7 + $0x240] sm:$0xff] }
 0x314   :  { %3259 = vmatprep.subr.bf16.mxu1 %v3258_v50  ;;  %v2666_v50 = vld [vmem:[%s5166_s7 + $0x250] sm:$0xff] }
 0x315   :  { %v3296_v52 = vpack.c.bf16 %v2666_v50, %v2664_v49  ;;  %v1359_v49 = vld [vmem:[%s5169_s10 + $0x50] sm:$0xff]  ;;  %v1360_v50 = vld [vmem:[%s5169_s10 + $0x58] sm:$0xff] }
 0x316   :  { %970 = vmatmul.mubr.f32.gmra.mrb[8].mxu1 %v865_v60  ;;  %v2672_v60 = vld [vmem:[%s5166_s7 + $0x280] sm:$0xff] }
 0x317   :  { %3261 = vmatpush1.bf16.msra.mxu1 %v3260_v56  ;;  %1040 = vmatprep.mubr.f32.mxu1 %v3644_v7  ;;  %v2673_v56 = vld [vmem:[%s5166_s7 + $0x288] sm:$0xff] }
 0x318   :  { %3263 = vmatprep.subr.bf16.mxu1 %v3262_v57  ;;  %v2675_v57 = vld [vmem:[%s5166_s7 + $0x298] sm:$0xff] }
 0x319   :  { %v3302_v59 = vpack.c.bf16 %v2675_v57, %v2673_v56 }
 0x31b   :  { %3265 = vmatpush1.bf16.msra.mxu1 %v3264_v63  ;;  %v2679_v63 = vld [vmem:[%s5166_s7 + $0x2b8] sm:$0xff] }
 0x31c   :  { %3267 = vmatprep.subr.bf16.mxu1 %v3266_v0  ;;  %v3304_v0 = vpack.c.bf16 %v2674_v61, %v2672_v60  ;;  %v3306_v1 = vpack.c.bf16 %v2679_v63, %v2677_v62 }
 0x31f   :  { %3269 = vmatpush1.bf16.msra.mxu1 %v3268_v5  ;;  %v2683_v5 = vld [vmem:[%s5166_s7 + $0x2d8] sm:$0xff] }
 0x320   :  { %3271 = vmatprep.subr.bf16.mxu1 %v3270_v6  ;;  %v3308_v6 = vpack.c.bf16 %v2678_v3, %v2676_v2  ;;  %v3310_v8 = vpack.c.bf16 %v2683_v5, %v2681_v4 }
 0x323   :  { %3273 = vmatpush1.bf16.msra.mxu1 %v3272_v14  ;;  %v2687_v14 = vld [vmem:[%s5166_s7 + $0x2f8] sm:$0xff] }
 0x324   :  { %3275 = vmatprep.subr.bf16.mxu1 %v3274_v15  ;;  %v3312_v15 = vpack.c.bf16 %v2682_v12, %v2680_v11  ;;  %v3314_v16 = vpack.c.bf16 %v2687_v14, %v2685_v13 }
 0x327   :  { %3277 = vmatpush1.bf16.msra.mxu1 %v3276_v20  ;;  %v1053_v20 = vld [vmem:[#allocation2 + $0x2] sm:$0xff] }
 0x328   :  { %3279 = vmatprep.subr.bf16.mxu1 %v3278_v21  ;;  %v1054_v21 = vld [vmem:[#allocation2 + $0xa] sm:$0x3f] }
 0x32b   :  { %3281 = vmatpush1.bf16.msra.mxu1 %v3280_v27 }
 0x32c   :  { %3283 = vmatprep.subr.bf16.mxu1 %v3282_v28 }
 0x32f   :  { %3285 = vmatpush1.bf16.msra.mxu1 %v3284_v35  ;;  %v2690_v35 = vld [vmem:[%s5167_s8 + $0x4] sm:$0xf] }
 0x330   :  { %3287 = vmatprep.subr.bf16.mxu1 %v3286_v36  ;;  %v3327_v36 = vpack.c.bf16 %v1350_v34, %v1349_v32  ;;  %v1626_v34 = vld [vmem:[%s5173_s14 + $0x80] sm:$0xff] }
 0x332   :  { %1041 = vmatmul.mubr.f32.vlgmr.msra.gmra.mrb[6].mxu1 %v825_v45  ;;  %v2671_v45 = vld [vmem:[%s5166_s7 + $0x278] sm:$0xff] }
 0x333   :  { %3289 = vmatpush1.bf16.msra.mxu1 %v3288_v41  ;;  %1046 = vmatprep.mubr.f32.mxu1 %v3644_v7  ;;  %v3298_v53 = vpack.c.bf16 %v2671_v45, %v2669_v43  ;;  %v1354_v41 = vld [vmem:[%s5169_s10 + $0x28] sm:$0xff]  ;;  %v1361_v43 = vld [vmem:[%s5169_s10 + $0x60] sm:$0xff] }
 0x334   :  { %3291 = vmatprep.subr.bf16.mxu1 %v3290_v42  ;;  %v3333_v42 = vpack.c.bf16 %v1354_v41, %v1353_v40  ;;  %v1362_v45 = vld [vmem:[%s5169_s10 + $0x68] sm:$0xff]  ;;  %v1634_v40 = vld [vmem:[%s5173_s14 + $0xc0] sm:$0xff] }
 0x335   :  { %v1638_v41 = vld [vmem:[%s5173_s14 + $0xe0] sm:$0xff] }
 0x336   :  { %1047 = vmatmul.mubr.f32.gmra.mrb[8].mxu1 %v831_v51  ;;  %v3342_v51 = vpack.c.bf16 %v1360_v50, %v1359_v49  ;;  %v3388_v46 = vpack.c.bf16 %v1638_v41, %v1634_v40  ;;  %v1655_v49 = vld [vmem:[%s5173_s14 + $0x168] sm:$0xff] }
 0x337   :  { %3293 = vmatpush1.bf16.msra.mxu1 %v3292_v10  ;;  %1152 = vmatprep.mubr.f32.mxu1 %v3644_v7  ;;  %v1358_v10 = vld [vmem:[%s5169_s10 + $0x48] sm:$0xff] }
 0x338   :  { %3295 = vmatprep.subr.bf16.mxu1 %v3294_v48  ;;  %v3339_v48 = vpack.c.bf16 %v1358_v10, %v1357_v9  ;;  %v1642_v9 = vld [vmem:[%s5173_s14 + $0x100] sm:$0xff] }
 0x339   :  { %v1646_v10 = vld [vmem:[%s5173_s14 + $0x120] sm:$0xff] }
 0x33a   :  { %v3392_v50 = vpack.c.bf16 %v1646_v10, %v1642_v9 }
 0x33b   :  { %3297 = vmatpush1.bf16.msra.mxu1 %v3296_v52  ;;  %v3345_v52 = vpack.c.bf16 %v1362_v45, %v1361_v43  ;;  %v1650_v43 = vld [vmem:[%s5173_s14 + $0x140] sm:$0xff] }
 0x33c   :  { %3299 = vmatprep.subr.bf16.mxu1 %v3298_v53  ;;  %v1363_v53 = vld [vmem:[%s5169_s10 + $0x70] sm:$0xff]  ;;  %v1654_v45 = vld [vmem:[%s5173_s14 + $0x160] sm:$0xff] }
 0x33d   :  { %v3348_v55 = vpack.c.bf16 %v1364_v54, %v1363_v53  ;;  %v1663_v53 = vld [vmem:[%s5173_s14 + $0x1a8] sm:$0xff]  ;;  %v3396_v54 = vpack.c.bf16 %v1654_v45, %v1650_v43 }
 0x33f   :  { %3301 = vmatpush1.bf16.msra.mxu1 %v3300_v58 }
 0x340   :  { %3303 = vmatprep.subr.bf16.mxu1 %v3302_v59  ;;  %v2693_v59 = vld [vmem:[%s5168_s9] ss:$0 sm:$0xff] }
 0x343   :  { %3305 = vmatpush1.bf16.msra.mxu1 %v3304_v0 }
 0x344   :  { %3307 = vmatprep.subr.bf16.mxu1 %v3306_v1 }
 0x347   :  { %3309 = vmatpush1.bf16.msra.mxu1 %v3308_v6 }
 0x348   :  { %3311 = vmatprep.subr.bf16.mxu1 %v3310_v8 }
 0x34b   :  { %3313 = vmatpush1.bf16.msra.mxu1 %v3312_v15 }
 0x34c   :  { %3315 = vmatprep.subr.bf16.mxu1 %v3314_v16 }
 0x34f   :  { %3317 = vmatpush1.bf16.msra.mxu1 %v3316_v19  ;;  %v1610_v19 = vld [vmem:[%s5173_s14] sm:$0xff] }
 0x350   :  { %3100 = vmatprep.subr.mxu1 %v3644_v7 }
 0x352   :  { %1153 = vmatmul.mubr.f32.vlgmr.msra.gmra.mrb[6].mxu1 %v1053_v20  ;;  %v3374_v20 = vpack.c.bf16 %v1615_v18, %v1611_v17  ;;  %v1513_v17 = vld [vmem:[%s5171_s12] sm:$0x1] }
 0x353   :  { %1158 = vmatprep.mubr.f32.mxu1 %v3644_v7 }
 0x356   :  { %1159 = vmatmul.mubr.f32.gmra.mrb[8].mxu1 %v1054_v21  ;;  %v1619_v21 = vld [vmem:[%s5173_s14 + $0x48] sm:$0xff] }
 0x357   :  { %3102 = vmatprep.mubr.msk.f32.mxu1 %vm3646_vm2, %v3644_v7 }
 0x425   :  { %v1154_v22 = vpop.f32.mrb[6].mxu1 }
 0x426   :  { %v1156_v23 = vpop.f32.mrb[7].mxu1 }
 0x427   :  { %v1169_v24 = vmax.f32 %v1154_v22, %v1156_v23  ;;  %v1623_v22 = vld [vmem:[%s5173_s14 + $0x68] sm:$0xff] }
 0x429   :  { %v1160_v25 = vpop.f32.mrb[8].mxu1 }
 0x42a   :  { %v1162_v27 = vpop.f32.mrb[9].mxu1 }
 0x42b   :  { %v1170_v28 = vmax.f32 %v1160_v25, %v1162_v27  ;;  %v1618_v25 = vld [vmem:[%s5173_s14 + $0x40] sm:$0xff] }
 0x42c   :  { %v1622_v27 = vld [vmem:[%s5173_s14 + $0x60] sm:$0xff] }
 0x42d   :  { %v3319_v29 = vpack.c.bf16 %v1170_v28, %v1169_v24  ;;  %v3378_v24 = vpack.c.bf16 %v1623_v22, %v1619_v21  ;;  %v1627_v28 = vld [vmem:[%s5173_s14 + $0x88] sm:$0xff]  ;;  %v1613_v22 = vld [vmem:[%s5173_s14 + $0x18] sm:$0xff] }
 0x42f   :  { %3321 = vmatpush3.bf16.msk.msra.mxu0 %vm3320_vm5, %v3319_v29 }
 0x430   :  { %3322 = vmatprep.subr.bf16.mxu0 %v3645_v26 }
 0x432   :  { %3021 = vmatmul.mubr.msk.f32.vlgmr.msra.gmra.mrb[10].mxu0 %vm1172_vm6, %v1171_v30  ;;  %v3380_v30 = vpack.c.bf16 %v1622_v27, %v1618_v25  ;;  %v1616_v25 = vld [vmem:[%s5173_s14 + $0x30] sm:$0xff] }
 0x433   :  { %3325 = vmatpush3.bf16.msk.msra.mxu0 %vm3320_vm5, %v3319_v29  ;;  %3027 = vmatprep.mubr.msk.f32.mxu0 %vm3646_vm2, %v3644_v7  ;;  %v1631_v29 = vld [vmem:[%s5173_s14 + $0xa8] sm:$0xff] }
 0x434   :  { %3326 = vmatprep.subr.bf16.mxu0 %v3645_v26  ;;  %v3382_v32 = vpack.c.bf16 %v1631_v29, %v1627_v28  ;;  %v1625_v28 = vld [vmem:[%s5173_s14 + $0x78] sm:$0xff] }
 0x436   :  { %3028 = vmatmul.mubr.msk.f32.vlgmr.msra.gmra.mrb[12].mxu0 %vm1172_vm6, %v2690_v35  ;;  %v1630_v35 = vld [vmem:[%s5173_s14 + $0xa0] sm:$0xff] }
 0x437   :  { %3328 = vmatpush3.bf16.msra.mxu0 %v3327_v36  ;;  %3062 = vmatprep.mubr.msk.f32.mxu0 %vm3646_vm2, %v3644_v7  ;;  %v3384_v38 = vpack.c.bf16 %v1630_v35, %v1626_v34 }
 0x438   :  { %3329 = vmatprep.subr.bf16.mxu0 %v3645_v26 }
 0x43b   :  { %3331 = vmatpush3.bf16.msra.mxu0 %v3330_v39 }
 0x43c   :  { %3332 = vmatprep.subr.bf16.mxu0 %v3645_v26 }
 0x43f   :  { %3334 = vmatpush3.bf16.msra.mxu0 %v3333_v42 }
 0x440   :  { %3335 = vmatprep.subr.bf16.mxu0 %v3645_v26 }
 0x443   :  { %3337 = vmatpush3.bf16.msra.mxu0 %v3336_v47 }
 0x444   :  { %3338 = vmatprep.subr.bf16.mxu0 %v3645_v26 }
 0x447   :  { %3340 = vmatpush3.bf16.msra.mxu0 %v3339_v48 }
 0x448   :  { %3341 = vmatprep.subr.bf16.mxu0 %v3645_v26 }
 0x44b   :  { %3343 = vmatpush3.bf16.msra.mxu0 %v3342_v51 }
 0x44c   :  { %3344 = vmatprep.subr.bf16.mxu0 %v3645_v26 }
 0x44f   :  { %3346 = vmatpush3.bf16.msra.mxu0 %v3345_v52 }
 0x450   :  { %3347 = vmatprep.subr.bf16.mxu0 %v3645_v26 }
 0x453   :  { %3349 = vmatpush3.bf16.msra.mxu0 %v3348_v55 }
 0x454   :  { %3350 = vmatprep.subr.bf16.mxu0 %v3645_v26 }
 0x505   :  { %v1245_v56 = vpop.f32.mrb[10].mxu0 }
 0x506   :  { %v3022_v57 = vpop.f32.mrb[11].mxu0 }
 0x507   :  { %v1662_v57 = vld [vmem:[%s5173_s14 + $0x1a0] sm:$0xff] }
 0x509   :  { %v1320_v58 = vpop.f32.mrb[12].mxu0 }
 0x50a   :  { %v1324_v60 = vmax.f32 %v1245_v56, %v1320_v58  ;;  %v3029_v61 = vpop.f32.mrb[13].mxu0  ;;  %v1658_v56 = vld [vmem:[%s5173_s14 + $0x180] sm:$0xff]  ;;  %v1667_v58 = vld [vmem:[%s5173_s14 + $0x1c8] sm:$0xff] }
 0x50c   :  { %v4453_v62 = vadd.f32 %v2693_v59, %v1324_v60  ;;  %v1671_v59 = vld [vmem:[%s5173_s14 + $0x1e8] sm:$0xff]  ;;  %v3400_v60 = vpack.c.bf16 %v1662_v57, %v1658_v56 }
 0x50d   :  { %v3402_v61 = vpack.c.bf16 %v1671_v59, %v1667_v58  ;;  %v1652_v58 = vld [vmem:[%s5173_s14 + $0x150] sm:$0xff] }
 0x50e   :  { %v1334_v63 = vsel %vm1333_vm7, %v4453_v62, 0.0  ;;  %v1341_v6 = vmul.f32 %v4453_v62, %v4453_v62  ;;  %v1656_v59 = vld [vmem:[%s5173_s14 + $0x170] sm:$0xff] }
 0x50f   :  { %v1335_v0 = vrot.slane %v1334_v63, 4 }
 0x510   :  { %v1342_v8 = vsel %vm1333_vm7, %v1341_v6, 0.0 }
 0x511   :  { %v1336_v1 = vadd.f32 %v1335_v0, %v1334_v63  ;;  %v1343_v11 = vrot.slane %v1342_v8, 4  ;;  %v1666_v63 = vld [vmem:[%s5173_s14 + $0x1c0] sm:$0xff] }
 0x512   :  { %v1670_v0 = vld [vmem:[%s5173_s14 + $0x1e0] sm:$0xff] }
 0x513   :  { %v1337_v2 = vrot.slane %v1336_v1, 2  ;;  %v1344_v12 = vadd.f32 %v1343_v11, %v1342_v8 }
 0x515   :  { %v1338_v3 = vadd.f32 %v1337_v2, %v1336_v1  ;;  %v1345_v13 = vrot.slane %v1344_v12, 2  ;;  %v3404_v1 = vpack.c.bf16 %v1670_v0, %v1666_v63  ;;  %v1665_v63 = vld [vmem:[%s5173_s14 + $0x1b8] sm:$0xff] }
 0x517   :  { %v1339_v4 = vrot.slane %v1338_v3, 1  ;;  %v1346_v14 = vadd.f32 %v1345_v13, %v1344_v12 }
 0x519   :  { %v1340_v5 = vadd.f32 %v1339_v4, %v1338_v3  ;;  %v1347_v15 = vrot.slane %v1346_v14, 1 }
 0x51b   :  { %3063 = vmatmul.mubr.f32.vlgmr.msra.gmra.mrb[14].mxu0 %v1340_v5  ;;  %v1348_v16 = vadd.f32 %v1347_v15, %v1346_v14  ;;  %v1507_v14 = vld [vmem:[%s5170_s11] sm:$0x1] }
 0x51c   :  { %3352 = vmatpush3.bf16.msra.mxu0 %v3327_v36  ;;  %3097 = vmatprep.mubr.msk.f32.mxu0 %vm3646_vm2, %v3644_v7  ;;  %v1635_v36 = vld [vmem:[%s5173_s14 + $0xc8] sm:$0xff] }
 0x51d   :  { %3353 = vmatprep.subr.bf16.mxu0 %v3645_v26 }
 0x520   :  { %3355 = vmatpush3.bf16.msra.mxu0 %v3330_v39  ;;  %v3386_v39 = vpack.c.bf16 %v1639_v37, %v1635_v36  ;;  %v1620_v36 = vld [vmem:[%s5173_s14 + $0x50] sm:$0xff] }
 0x521   :  { %3356 = vmatprep.subr.bf16.mxu0 %v3645_v26  ;;  %v1624_v37 = vld [vmem:[%s5173_s14 + $0x70] sm:$0xff] }
 0x522   :  { %v3412_v40 = vpack.c.bf16 %v1624_v37, %v1620_v36  ;;  %v2718_v36 = vld [vmem:[%s5173_s14 + $0x298] sm:$0xff] }
 0x523   :  { %v2722_v37 = vld [vmem:[%s5173_s14 + $0x2b8] sm:$0xff] }
 0x524   :  { %3358 = vmatpush3.bf16.msra.mxu0 %v3333_v42  ;;  %v1643_v42 = vld [vmem:[%s5173_s14 + $0x108] sm:$0xff] }
 0x525   :  { %3359 = vmatprep.subr.bf16.mxu0 %v3645_v26 }
 0x528   :  { %3361 = vmatpush3.bf16.msra.mxu0 %v3336_v47  ;;  %v3390_v47 = vpack.c.bf16 %v1647_v44, %v1643_v42  ;;  %v1628_v42 = vld [vmem:[%s5173_s14 + $0x90] sm:$0xff] }
 0x529   :  { %3362 = vmatprep.subr.bf16.mxu0 %v3645_v26  ;;  %v1632_v44 = vld [vmem:[%s5173_s14 + $0xb0] sm:$0xff] }
 0x52a   :  { %v3416_v9 = vpack.c.bf16 %v1632_v44, %v1628_v42  ;;  %v2716_v42 = vld [vmem:[%s5173_s14 + $0x288] sm:$0xff] }
 0x52b   :  { %v2720_v44 = vld [vmem:[%s5173_s14 + $0x2a8] sm:$0xff] }
 0x52c   :  { %3364 = vmatpush3.bf16.msra.mxu0 %v3339_v48  ;;  %v1651_v48 = vld [vmem:[%s5173_s14 + $0x148] sm:$0xff] }
 0x52d   :  { %3365 = vmatprep.subr.bf16.mxu0 %v3645_v26 }
 0x530   :  { %3367 = vmatpush3.bf16.msra.mxu0 %v3342_v51  ;;  %v3394_v51 = vpack.c.bf16 %v1655_v49, %v1651_v48  ;;  %v1636_v48 = vld [vmem:[%s5173_s14 + $0xd0] sm:$0xff] }
 0x531   :  { %3368 = vmatprep.subr.bf16.mxu0 %v3645_v26  ;;  %v1640_v49 = vld [vmem:[%s5173_s14 + $0xf0] sm:$0xff] }
 0x532   :  { %v3420_v43 = vpack.c.bf16 %v1640_v49, %v1636_v48  ;;  %v2730_v48 = vld [vmem:[%s5173_s14 + $0x2f8] sm:$0xff] }
 0x534   :  { %3370 = vmatpush3.bf16.msra.mxu0 %v3345_v52  ;;  %v1659_v52 = vld [vmem:[%s5173_s14 + $0x188] sm:$0xff] }
 0x535   :  { %3371 = vmatprep.subr.bf16.mxu0 %v3645_v26  ;;  %v1614_v26 = vld [vmem:[%s5173_s14 + $0x20] sm:$0xff] }
 0x536   :  { %v3376_v23 = vpack.c.bf16 %v1614_v26, %v1610_v19 }
 0x538   :  { %3373 = vmatpush3.bf16.msra.mxu0 %v3348_v55  ;;  %v3398_v55 = vpack.c.bf16 %v1663_v53, %v1659_v52  ;;  %v1644_v52 = vld [vmem:[%s5173_s14 + $0x110] sm:$0xff] }
 0x539   :  { %3375 = vmatprep.subr.bf16.mxu0 %v3374_v20  ;;  %v1648_v53 = vld [vmem:[%s5173_s14 + $0x130] sm:$0xff] }
 0x53a   :  { %v3424_v56 = vpack.c.bf16 %v1648_v53, %v1644_v52  ;;  %v2724_v52 = vld [vmem:[%s5173_s14 + $0x2c8] sm:$0xff] }
 0x53b   :  { %3098 = vmatmul.mubr.f32.vlgmr.msra.gmra.mrb[16].mxu0 %v1348_v16 }
 0x53c   :  { %1738 = vmatprep.mubr.f32.mxu0 %v3644_v7  ;;  %3377 = vmatpush1.bf16.msra.mxu0 %v3376_v23  ;;  %v1617_v23 = vld [vmem:[%s5173_s14 + $0x38] sm:$0xff] }
 0x53d   :  { %3379 = vmatprep.subr.bf16.mxu0 %v3378_v24  ;;  %v1612_v24 = vld [vmem:[%s5173_s14 + $0x10] sm:$0xff]  ;;  %v3406_v29 = vpack.c.bf16 %v1617_v23, %v1613_v22  ;;  %v2699_v22 = vld [vmem:[%s5173_s14 + $0x200] sm:$0xff] }
 0x53e   :  { %v3408_v34 = vpack.c.bf16 %v1616_v25, %v1612_v24  ;;  %v2703_v23 = vld [vmem:[%s5173_s14 + $0x220] sm:$0xff]  ;;  %v2708_v25 = vld [vmem:[%s5173_s14 + $0x248] sm:$0xff] }
 0x540   :  { %3381 = vmatpush1.bf16.msra.mxu0 %v3380_v30 }
 0x541   :  { %3383 = vmatprep.subr.bf16.mxu0 %v3382_v32  ;;  %v1532_v32 = vld [vmem:[%s5172_s13] sm:$0x3] }
 0x544   :  { %3385 = vmatpush1.bf16.msra.mxu0 %v3384_v38  ;;  %v1629_v38 = vld [vmem:[%s5173_s14 + $0x98] sm:$0xff] }
 0x545   :  { %3387 = vmatprep.subr.bf16.mxu0 %v3386_v39  ;;  %v1633_v39 = vld [vmem:[%s5173_s14 + $0xb8] sm:$0xff] }
 0x546   :  { %v3414_v41 = vpack.c.bf16 %v1633_v39, %v1629_v38  ;;  %v2696_v38 = vld [vmem:[%s5172_s13 + $0x2] sm:$0x3]  ;;  %v3440_v39 = vpack.c.bf16 %v2703_v23, %v2699_v22 }
 0x547   :  { %v2739_v23 = vld [vmem:[%s5173_s14 + $0x340] sm:$0xff] }
 0x548   :  { %3389 = vmatpush1.bf16.msra.mxu0 %v3388_v46  ;;  %v1637_v46 = vld [vmem:[%s5173_s14 + $0xd8] sm:$0xff] }
 0x549   :  { %3391 = vmatprep.subr.bf16.mxu0 %v3390_v47  ;;  %v1641_v47 = vld [vmem:[%s5173_s14 + $0xf8] sm:$0xff] }
 0x54a   :  { %v3418_v10 = vpack.c.bf16 %v1641_v47, %v1637_v46  ;;  %v3478_v46 = vpack.c.bf16 %v2722_v37, %v2718_v36  ;;  %v2717_v47 = vld [vmem:[%s5173_s14 + $0x290] sm:$0xff]  ;;  %v2762_v36 = vld [vmem:[%s5173_s14 + $0x3f8] sm:$0xff] }
 0x54c   :  { %3393 = vmatpush1.bf16.msra.mxu0 %v3392_v50  ;;  %v1645_v50 = vld [vmem:[%s5173_s14 + $0x118] sm:$0xff] }
 0x54d   :  { %3395 = vmatprep.subr.bf16.mxu0 %v3394_v51  ;;  %v1649_v51 = vld [vmem:[%s5173_s14 + $0x138] sm:$0xff] }
 0x54e   :  { %v3422_v45 = vpack.c.bf16 %v1649_v51, %v1645_v50  ;;  %v3446_v50 = vpack.c.bf16 %v2720_v44, %v2716_v42  ;;  %v2715_v51 = vld [vmem:[%s5173_s14 + $0x280] sm:$0xff]  ;;  %v2757_v44 = vld [vmem:[%s5173_s14 + $0x3d0] sm:$0xff] }
 0x550   :  { %3397 = vmatpush1.bf16.msra.mxu0 %v3396_v54  ;;  %v1653_v54 = vld [vmem:[%s5173_s14 + $0x158] sm:$0xff] }
 0x551   :  { %3399 = vmatprep.subr.bf16.mxu0 %v3398_v55  ;;  %v1657_v55 = vld [vmem:[%s5173_s14 + $0x178] sm:$0xff] }
 0x552   :  { %v3426_v57 = vpack.c.bf16 %v1657_v55, %v1653_v54  ;;  %v2725_v54 = vld [vmem:[%s5173_s14 + $0x2d0] sm:$0xff] }
 0x553   :  { %v2729_v55 = vld [vmem:[%s5173_s14 + $0x2f0] sm:$0xff] }
 0x554   :  { %3401 = vmatpush1.bf16.msra.mxu0 %v3400_v60  ;;  %v3428_v60 = vpack.c.bf16 %v1656_v59, %v1652_v58 }
 0x555   :  { %3403 = vmatprep.subr.bf16.mxu0 %v3402_v61  ;;  %v1661_v61 = vld [vmem:[%s5173_s14 + $0x198] sm:$0xff] }
 0x556   :  { %v3430_v0 = vpack.c.bf16 %v1665_v63, %v1661_v61  ;;  %v2727_v61 = vld [vmem:[%s5173_s14 + $0x2e0] sm:$0xff]  ;;  %v3484_v63 = vpack.c.bf16 %v2729_v55, %v2725_v54  ;;  %v2381_v54 = vld [vmem:[%s5177_s18 + $0x188] sm:$0xff] }
 0x557   :  { %v2332_v55 = vld [vmem:[%s5177_s18] sm:$0xff] }
 0x558   :  { %3405 = vmatpush1.bf16.msra.mxu0 %v3404_v1  ;;  %v1660_v1 = vld [vmem:[%s5173_s14 + $0x190] sm:$0xff] }
 0x559   :  { %3105 = vmatprep.subr.mxu0 %v3644_v7 }
 0x5ee   :  { %v1431_v2 = vpop.f32.mrb[14].mxu0 }
 0x5ef   :  { %v3064_v3 = vpop.f32.mrb[15].mxu0  ;;  %v1435_v4 = vmul.f32 0.125, %v1431_v2  ;;  %v1664_v2 = vld [vmem:[%s5173_s14 + $0x1b0] sm:$0xff] }
 0x5f0   :  { %v3432_v3 = vpack.c.bf16 %v1664_v2, %v1660_v1  ;;  %v2736_v1 = vld [vmem:[%s5173_s14 + $0x328] sm:$0xff] }
 0x5f1   :  { %v1508_v6 = vmul.f32 %v1435_v4, %v1435_v4 }
 0x60e   :  { %v1502_v5 = vpop.f32.mrb[16].mxu0 }
 0x60f   :  { %v1506_v8 = vmul.f32 0.125, %v1502_v5  ;;  %v3099_v11 = vpop.f32.mrb[17].mxu0  ;;  %v1673_v5 = vld [vmem:[%s5173_s14 + $0x1f8] sm:$0xff] }
 0x610   :  { %v1672_v11 = vld [vmem:[%s5173_s14 + $0x1f0] sm:$0xff] }
 0x611   :  { %v1509_v12 = vsub.f32 %v1506_v8, %v1508_v6  ;;  %v1668_v8 = vld [vmem:[%s5173_s14 + $0x1d0] sm:$0xff] }
 0x613   :  { %v1510_v13 = vadd.f32 1e-05, %v1509_v12  ;;  %v3436_v12 = vpack.c.bf16 %v1672_v11, %v1668_v8 }
 0x615   :  { %3606 = vrsqrt.f32 %v1510_v13  ;;  %v2702_v13 = vld [vmem:[%s5173_s14 + $0x218] sm:$0xff] }
 0x61f   :  { %v3607_v15 = vpop.eup %3606 }
 0x620   :  { %v1512_v16 = vmul.f32 %v3607_v15, %v1507_v14  ;;  %v2706_v14 = vld [vmem:[%s5173_s14 + $0x238] sm:$0xff] }
 0x621   :  { %v3470_v15 = vpack.c.bf16 %v2706_v14, %v2702_v13  ;;  %v2735_v13 = vld [vmem:[%s5173_s14 + $0x320] sm:$0xff] }
 0x622   :  { %v1514_v18 = vmul.f32 %v1512_v16, %v1435_v4  ;;  %v1520_v19 = vrot.slane %v1512_v16, %v4171_v33  ;;  %v1669_v4 = vld [vmem:[%s5173_s14 + $0x1d8] sm:$0xff]  ;;  %v2700_v16 = vld [vmem:[%s5173_s14 + $0x208] sm:$0xff] }
 0x623   :  { %v3434_v6 = vpack.c.bf16 %v1673_v5, %v1669_v4  ;;  %v2737_v4 = vld [vmem:[%s5173_s14 + $0x330] sm:$0xff]  ;;  %v2742_v5 = vld [vmem:[%s5173_s14 + $0x358] sm:$0xff] }
 0x624   :  { %v1515_v20 = vsub.f32 %v1513_v17, %v1514_v18  ;;  %v1522_v26 = vmul.f32 %v1520_v19, %v4453_v62  ;;  %v1621_v62 = vld [vmem:[%s5173_s14 + $0x58] sm:$0xff]  ;;  %v2704_v17 = vld [vmem:[%s5173_s14 + $0x228] sm:$0xff]  ;;  %v2701_v18 = vld [vmem:[%s5173_s14 + $0x210] sm:$0xff] }
 0x625   :  { %v3410_v35 = vpack.c.bf16 %v1625_v28, %v1621_v62  ;;  %v2705_v19 = vld [vmem:[%s5173_s14 + $0x230] sm:$0xff]  ;;  %v2712_v28 = vld [vmem:[%s5173_s14 + $0x268] sm:$0xff] }
 0x626   :  { %v1527_v21 = vrot.slane %v1515_v20, %v4171_v33  ;;  %v2710_v20 = vld [vmem:[%s5173_s14 + $0x258] sm:$0xff]  ;;  %v3472_v24 = vpack.c.bf16 %v2705_v19, %v2701_v18  ;;  %v2741_v18 = vld [vmem:[%s5173_s14 + $0x350] sm:$0xff] }
 0x627   :  { %v2745_v19 = vld [vmem:[%s5173_s14 + $0x370] sm:$0xff] }
 0x628   :  { %v4588_v27 = vadd.f32 %v1527_v21, %v1522_v26  ;;  %v2714_v26 = vld [vmem:[%s5173_s14 + $0x278] sm:$0xff]  ;;  %v3438_v21 = vpack.c.bf16 %v2704_v17, %v2700_v16  ;;  %v2744_v16 = vld [vmem:[%s5173_s14 + $0x368] sm:$0xff] }
 0x62a   :  { %v1530_v30 = vmax.f32 %v4588_v27, 0.0  ;;  %v2711_v27 = vld [vmem:[%s5173_s14 + $0x260] sm:$0xff] }
 0x62c   :  { %3101 = vmatpush3.msk.msra.mxu1 %vm1333_vm7, %v1530_v30 }
 0x62d   :  { %3103 = vmatmul.mubr.msk.f32.vlgmr.msra.gmra.mrb[10].mxu1 %vm1533_vm8, %v1532_v32  ;;  %3407 = vmatprep.subr.bf16.mxu1 %v3406_v29  ;;  %v3474_v29 = vpack.c.bf16 %v2714_v26, %v2710_v20  ;;  %v2709_v32 = vld [vmem:[%s5173_s14 + $0x250] sm:$0xff]  ;;  %v2750_v20 = vld [vmem:[%s5173_s14 + $0x398] sm:$0xff] }
 0x62e   :  { %3409 = vmatpush1.bf16.msra.mxu1 %v3408_v34  ;;  %1809 = vmatprep.mubr.f32.mxu1 %v3644_v7  ;;  %v2713_v34 = vld [vmem:[%s5173_s14 + $0x270] sm:$0xff]  ;;  %v2754_v26 = vld [vmem:[%s5173_s14 + $0x3b8] sm:$0xff] }
 0x62f   :  { %3411 = vmatprep.subr.bf16.mxu1 %v3410_v35 }
 0x632   :  { %3413 = vmatpush1.bf16.msra.mxu1 %v3412_v40  ;;  %v3442_v40 = vpack.c.bf16 %v2712_v28, %v2708_v25  ;;  %v3492_v25 = vpack.c.bf16 %v2745_v19, %v2741_v18  ;;  %v2752_v28 = vld [vmem:[%s5173_s14 + $0x3a8] sm:$0xff]  ;;  %v2336_v19 = vld [vmem:[%s5177_s18 + $0x20] sm:$0xff] }
 0x633   :  { %3415 = vmatprep.subr.bf16.mxu1 %v3414_v41  ;;  %v2707_v41 = vld [vmem:[%s5173_s14 + $0x240] sm:$0xff]  ;;  %v2385_v18 = vld [vmem:[%s5177_s18 + $0x1a8] sm:$0xff] }
 0x634   :  { %v3444_v49 = vpack.c.bf16 %v2711_v27, %v2707_v41  ;;  %v2756_v27 = vld [vmem:[%s5173_s14 + $0x3c8] sm:$0xff] }
 0x636   :  { %3417 = vmatpush1.bf16.msra.mxu1 %v3416_v9  ;;  %v2721_v9 = vld [vmem:[%s5173_s14 + $0x2b0] sm:$0xff] }
 0x637   :  { %3419 = vmatprep.subr.bf16.mxu1 %v3418_v10  ;;  %v2726_v10 = vld [vmem:[%s5173_s14 + $0x2d8] sm:$0xff] }
 0x638   :  { %v3482_v53 = vpack.c.bf16 %v2730_v48, %v2726_v10  ;;  %v2755_v10 = vld [vmem:[%s5173_s14 + $0x3c0] sm:$0xff] }
 0x639   :  { %v2759_v48 = vld [vmem:[%s5173_s14 + $0x3e0] sm:$0xff] }
 0x63a   :  { %3421 = vmatpush1.bf16.msra.mxu1 %v3420_v43  ;;  %v2719_v43 = vld [vmem:[%s5173_s14 + $0x2a0] sm:$0xff] }
 0x63b   :  { %3423 = vmatprep.subr.bf16.mxu1 %v3422_v45  ;;  %v3480_v45 = vpack.c.bf16 %v2721_v9, %v2717_v47  ;;  %v3448_v58 = vpack.c.bf16 %v2719_v43, %v2715_v51 }
 0x63e   :  { %3425 = vmatpush1.bf16.msra.mxu1 %v3424_v56  ;;  %v2734_v56 = vld [vmem:[%s5173_s14 + $0x318] sm:$0xff] }
 0x63f   :  { %3427 = vmatprep.subr.bf16.mxu1 %v3426_v57  ;;  %v2738_v57 = vld [vmem:[%s5173_s14 + $0x338] sm:$0xff] }
 0x640   :  { %v3486_v2 = vpack.c.bf16 %v2738_v57, %v2734_v56  ;;  %v2333_v56 = vld [vmem:[%s5177_s18 + $0x8] sm:$0xff] }
 0x642   :  { %3429 = vmatpush1.bf16.msra.mxu1 %v3428_v60  ;;  %v2723_v60 = vld [vmem:[%s5173_s14 + $0x2c0] sm:$0xff] }
 0x643   :  { %3431 = vmatprep.subr.bf16.mxu1 %v3430_v0  ;;  %v2732_v0 = vld [vmem:[%s5173_s14 + $0x308] sm:$0xff]  ;;  %v3452_v8 = vpack.c.bf16 %v2727_v61, %v2723_v60 }
 0x644   :  { %v3454_v11 = vpack.c.bf16 %v2736_v1, %v2732_v0  ;;  %v2365_v60 = vld [vmem:[%s5177_s18 + $0x108] sm:$0xff]  ;;  %v2351_v0 = vld [vmem:[%s5177_s18 + $0x98] sm:$0xff]  ;;  %v2382_v1 = vld [vmem:[%s5177_s18 + $0x190] sm:$0xff] }
 0x646   :  { %3433 = vmatpush1.bf16.msra.mxu1 %v3432_v3  ;;  %v2733_v3 = vld [vmem:[%s5173_s14 + $0x310] sm:$0xff] }
 0x647   :  { %3435 = vmatprep.subr.bf16.mxu1 %v3434_v6  ;;  %v2746_v6 = vld [vmem:[%s5173_s14 + $0x378] sm:$0xff]  ;;  %v3488_v14 = vpack.c.bf16 %v2737_v4, %v2733_v3  ;;  %v2334_v4 = vld [vmem:[%s5177_s18 + $0x10] sm:$0xff] }
 0x648   :  { %v3490_v17 = vpack.c.bf16 %v2746_v6, %v2742_v5  ;;  %v2383_v3 = vld [vmem:[%s5177_s18 + $0x198] sm:$0xff] }
 0x649   :  { %v2335_v5 = vld [vmem:[%s5177_s18 + $0x18] sm:$0xff]  ;;  %v3538_v6 = vpack.c.bf16 %v2383_v3, %v2382_v1  ;;  %v2344_v3 = vld [vmem:[%s5177_s18 + $0x60] sm:$0xff] }
 0x64a   :  { %3437 = vmatpush1.bf16.msra.mxu1 %v3436_v12  ;;  %v2731_v12 = vld [vmem:[%s5173_s14 + $0x300] sm:$0xff] }
 0x64b   :  { %3471 = vmatprep.subr.bf16.mxu1 %v3470_v15  ;;  %v2740_v15 = vld [vmem:[%s5173_s14 + $0x348] sm:$0xff] }
 0x64c   :  { %v3458_v22 = vpack.c.bf16 %v2744_v16, %v2740_v15  ;;  %v2353_v15 = vld [vmem:[%s5177_s18 + $0xa8] sm:$0xff]  ;;  %v2384_v16 = vld [vmem:[%s5177_s18 + $0x1a0] sm:$0xff] }
 0x700   :  { %v1606_v62 = vpop.f32.mrb[10].mxu1 }
 0x701   :  { %1739 = vmatmul.mubr.f32.vlgmr.msra.gmra.mrb[18].mxu0 %v1606_v62  ;;  %v3104_v35 = vpop.f32.mrb[11].mxu1  ;;  %1810 = vmatmul.mubr.f32.vlgmr.msra.gmra.mrb[12].mxu1 %v1606_v62  ;;  %v2748_v62 = vld [vmem:[%s5173_s14 + $0x388] sm:$0xff] }
 0x702   :  { %3106 = vmatpush3.msk.msra.mxu0 %vm1333_vm7, %v1530_v30  ;;  %3107 = vmatprep.mubr.msk.f32.mxu0 %vm3646_vm2, %v3644_v7  ;;  %v3476_v30 = vpack.c.bf16 %v2713_v34, %v2709_v32  ;;  %v2749_v32 = vld [vmem:[%s5173_s14 + $0x390] sm:$0xff]  ;;  %v2758_v35 = vld [vmem:[%s5173_s14 + $0x3d8] sm:$0xff] }
 0x703   :  { %3439 = vmatprep.subr.bf16.mxu0 %v3438_v21  ;;  %3473 = vmatpush1.bf16.msra.mxu1 %v3472_v24  ;;  %v3456_v21 = vpack.c.bf16 %v2735_v13, %v2731_v12  ;;  %v2743_v24 = vld [vmem:[%s5173_s14 + $0x360] sm:$0xff]  ;;  %v2753_v34 = vld [vmem:[%s5173_s14 + $0x3b0] sm:$0xff]  ;;  %v3498_v42 = vpack.c.bf16 %v2762_v36, %v2758_v35  ;;  %v2367_v12 = vld [vmem:[%s5177_s18 + $0x118] sm:$0xff] }
 0x704   :  { %3475 = vmatprep.subr.bf16.mxu1 %v3474_v29  ;;  %2116 = vmatprep.mubr.f32.mxu1 %v3644_v7  ;;  %v3494_v29 = vpack.c.bf16 %v2754_v26, %v2750_v20  ;;  %v3460_v37 = vpack.c.bf16 %v2743_v24, %v2739_v23  ;;  %v3496_v41 = vpack.c.bf16 %v2753_v34, %v2749_v32  ;;  %v2337_v20 = vld [vmem:[%s5177_s18 + $0x28] sm:$0xff]  ;;  %v2387_v32 = vld [vmem:[%s5177_s18 + $0x1b8] sm:$0xff]  ;;  %v2338_v34 = vld [vmem:[%s5177_s18 + $0x30] sm:$0xff] }
 0x705   :  { %3108 = vmatmul.mubr.msk.f32.vlgmr.msra.gmra.mrb[20].mxu0 %vm1533_vm8, %v2696_v38  ;;  %v3462_v38 = vpack.c.bf16 %v2752_v28, %v2748_v62  ;;  %v3542_v26 = vpack.c.bf16 %v2385_v18, %v2384_v16  ;;  %v2369_v23 = vld [vmem:[%s5177_s18 + $0x128] sm:$0xff]  ;;  %v2355_v62 = vld [vmem:[%s5177_s18 + $0xb8] sm:$0xff]  ;;  %v2386_v28 = vld [vmem:[%s5177_s18 + $0x1b0] sm:$0xff] }
 0x706   :  { %3441 = vmatpush1.bf16.msra.mxu0 %v3440_v39  ;;  %2045 = vmatprep.mubr.f32.mxu0 %v3644_v7  ;;  %v2728_v7 = vld [vmem:[%s5173_s14 + $0x2e8] sm:$0xff]  ;;  %v2747_v39 = vld [vmem:[%s5173_s14 + $0x380] sm:$0xff]  ;;  %v2339_v35 = vld [vmem:[%s5177_s18 + $0x38] sm:$0xff]  ;;  %v3546_v36 = vpack.c.bf16 %v2387_v32, %v2386_v28 }
 0x707   :  { %3443 = vmatprep.subr.bf16.mxu0 %v3442_v40  ;;  %3477 = vmatpush1.bf16.msra.mxu1 %v3476_v30  ;;  %v3450_v59 = vpack.c.bf16 %v2728_v7, %v2724_v52  ;;  %v2751_v40 = vld [vmem:[%s5173_s14 + $0x3a0] sm:$0xff]  ;;  %v2760_v30 = vld [vmem:[%s5173_s14 + $0x3e8] sm:$0xff]  ;;  %v2395_v16 = vld [vmem:[%s5177_s18 + $0x1f8] sm:$0xff] }
 0x708   :  { %3479 = vmatprep.subr.bf16.mxu1 %v3478_v46  ;;  %v2761_v46 = vld [vmem:[%s5173_s14 + $0x3f0] sm:$0xff]  ;;  %v3464_v47 = vpack.c.bf16 %v2751_v40, %v2747_v39  ;;  %v3466_v9 = vpack.c.bf16 %v2760_v30, %v2756_v27  ;;  %v2349_v52 = vld [vmem:[%s5177_s18 + $0x88] sm:$0xff]  ;;  %v2380_v7 = vld [vmem:[%s5177_s18 + $0x180] sm:$0xff] }
 0x709   :  { %v3534_v57 = vpack.c.bf16 %v2381_v54, %v2380_v7  ;;  %v2371_v39 = vld [vmem:[%s5177_s18 + $0x138] sm:$0xff]  ;;  %v2357_v27 = vld [vmem:[%s5177_s18 + $0xc8] sm:$0xff]  ;;  %v2388_v30 = vld [vmem:[%s5177_s18 + $0x1c0] sm:$0xff] }
 0x70a   :  { %3445 = vmatpush1.bf16.msra.mxu0 %v3444_v49  ;;  %v3500_v49 = vpack.c.bf16 %v2761_v46, %v2757_v44  ;;  %v2389_v44 = vld [vmem:[%s5177_s18 + $0x1c8] sm:$0xff]  ;;  %v2340_v46 = vld [vmem:[%s5177_s18 + $0x40] sm:$0xff]  ;;  %v2391_v7 = vld [vmem:[%s5177_s18 + $0x1d8] sm:$0xff] }
 0x70b   :  { %3447 = vmatprep.subr.bf16.mxu0 %v3446_v50  ;;  %3481 = vmatpush1.bf16.msra.mxu1 %v3480_v45  ;;  %v3468_v50 = vpack.c.bf16 %v2759_v48, %v2755_v10  ;;  %v2348_v45 = vld [vmem:[%s5177_s18 + $0x80] sm:$0xff]  ;;  %v2343_v54 = vld [vmem:[%s5177_s18 + $0x58] sm:$0xff] }
 0x70c   :  { %3483 = vmatprep.subr.bf16.mxu1 %v3482_v53  ;;  %v3502_v53 = vpack.c.bf16 %v2349_v52, %v2348_v45  ;;  %v2372_v48 = vld [vmem:[%s5177_s18 + $0x140] sm:$0xff]  ;;  %v2390_v45 = vld [vmem:[%s5177_s18 + $0x1d0] sm:$0xff] }
 0x70e   :  { %3449 = vmatpush1.bf16.msra.mxu0 %v3448_v58  ;;  %v3504_v58 = vpack.c.bf16 %v2333_v56, %v2332_v55  ;;  %v3554_v55 = vpack.c.bf16 %v2391_v7, %v2390_v45 }
 0x70f   :  { %3451 = vmatprep.subr.bf16.mxu0 %v3450_v59  ;;  %3485 = vmatpush1.bf16.msra.mxu1 %v3484_v63  ;;  %v2364_v59 = vld [vmem:[%s5177_s18 + $0x100] sm:$0xff]  ;;  %v2350_v63 = vld [vmem:[%s5177_s18 + $0x90] sm:$0xff] }
 0x710   :  { %3487 = vmatprep.subr.bf16.mxu1 %v3486_v2  ;;  %v3536_v61 = vpack.c.bf16 %v2365_v60, %v2364_v59  ;;  %v3506_v2 = vpack.c.bf16 %v2351_v0, %v2350_v63  ;;  %v2360_v59 = vld [vmem:[%s5177_s18 + $0xe0] sm:$0xff]  ;;  %v2393_v0 = vld [vmem:[%s5177_s18 + $0x1e8] sm:$0xff] }
 0x711   :  { %v2392_v63 = vld [vmem:[%s5177_s18 + $0x1e0] sm:$0xff] }
 0x712   :  { %3453 = vmatpush1.bf16.msra.mxu0 %v3452_v8  ;;  %v3508_v8 = vpack.c.bf16 %v2335_v5, %v2334_v4  ;;  %v2345_v4 = vld [vmem:[%s5177_s18 + $0x68] sm:$0xff]  ;;  %v2376_v5 = vld [vmem:[%s5177_s18 + $0x160] sm:$0xff] }
 0x713   :  { %3455 = vmatprep.subr.bf16.mxu0 %v3454_v11  ;;  %3489 = vmatpush1.bf16.msra.mxu1 %v3488_v14  ;;  %v2366_v11 = vld [vmem:[%s5177_s18 + $0x110] sm:$0xff]  ;;  %v2352_v14 = vld [vmem:[%s5177_s18 + $0xa0] sm:$0xff] }
 0x714   :  { %3491 = vmatprep.subr.bf16.mxu1 %v3490_v17  ;;  %v3540_v13 = vpack.c.bf16 %v2367_v12, %v2366_v11  ;;  %v3510_v17 = vpack.c.bf16 %v2353_v15, %v2352_v14  ;;  %v2362_v11 = vld [vmem:[%s5177_s18 + $0xf0] sm:$0xff]  ;;  %v2363_v12 = vld [vmem:[%s5177_s18 + $0xf8] sm:$0xff] }
 0x715   :  { %v3530_v14 = vpack.c.bf16 %v2363_v12, %v2362_v11  ;;  %v2394_v15 = vld [vmem:[%s5177_s18 + $0x1f0] sm:$0xff] }
 0x716   :  { %3457 = vmatpush1.bf16.msra.mxu0 %v3456_v21  ;;  %v3512_v21 = vpack.c.bf16 %v2337_v20, %v2336_v19  ;;  %v3562_v18 = vpack.c.bf16 %v2395_v16, %v2394_v15  ;;  %v2347_v19 = vld [vmem:[%s5177_s18 + $0x78] sm:$0xff]  ;;  %v2378_v20 = vld [vmem:[%s5177_s18 + $0x170] sm:$0xff] }
 0x717   :  { %3459 = vmatprep.subr.bf16.mxu0 %v3458_v22  ;;  %3493 = vmatpush1.bf16.msra.mxu1 %v3492_v25  ;;  %v2368_v22 = vld [vmem:[%s5177_s18 + $0x120] sm:$0xff]  ;;  %v2354_v25 = vld [vmem:[%s5177_s18 + $0xb0] sm:$0xff] }
 0x718   :  { %3495 = vmatprep.subr.bf16.mxu1 %v3494_v29  ;;  %v3544_v24 = vpack.c.bf16 %v2369_v23, %v2368_v22  ;;  %v3514_v29 = vpack.c.bf16 %v2355_v62, %v2354_v25  ;;  %v5079_v23 = vsub.s32 2, %v4165_v31  ;;  %v5085_v25 = vsub.s32 1, %v4165_v31 }
 0x719   :  { %v5088_v62 = vsub.s32 3, %v4165_v31 }
 0x71a   :  { %3461 = vmatpush1.bf16.msra.mxu0 %v3460_v37  ;;  %v3516_v37 = vpack.c.bf16 %v2339_v35, %v2338_v34 }
 0x71b   :  { %3463 = vmatprep.subr.bf16.mxu0 %v3462_v38  ;;  %3497 = vmatpush1.bf16.msra.mxu1 %v3496_v41  ;;  %v2370_v38 = vld [vmem:[%s5177_s18 + $0x130] sm:$0xff]  ;;  %v2356_v41 = vld [vmem:[%s5177_s18 + $0xc0] sm:$0xff] }
 0x71c   :  { %3499 = vmatprep.subr.bf16.mxu1 %v3498_v42  ;;  %v3548_v40 = vpack.c.bf16 %v2371_v39, %v2370_v38  ;;  %v3518_v42 = vpack.c.bf16 %v2357_v27, %v2356_v41 }
 0x71e   :  { %3465 = vmatpush1.bf16.msra.mxu0 %v3464_v47  ;;  %v2341_v47 = vld [vmem:[%s5177_s18 + $0x48] sm:$0xff] }
 0x71f   :  { %3467 = vmatprep.subr.bf16.mxu0 %v3466_v9  ;;  %3501 = vmatpush1.bf16.msra.mxu1 %v3500_v49  ;;  %v3550_v9 = vpack.c.bf16 %v2389_v44, %v2388_v30  ;;  %v3520_v10 = vpack.c.bf16 %v2341_v47, %v2340_v46  ;;  %v2373_v49 = vld [vmem:[%s5177_s18 + $0x148] sm:$0xff] }
 0x720   :  { %3503 = vmatprep.subr.bf16.mxu1 %v3502_v53  ;;  %v2342_v53 = vld [vmem:[%s5177_s18 + $0x50] sm:$0xff] }
 0x721   :  { %v3524_v56 = vpack.c.bf16 %v2343_v54, %v2342_v53 }
 0x722   :  { %3469 = vmatpush1.bf16.msra.mxu0 %v3468_v50  ;;  %v3552_v50 = vpack.c.bf16 %v2373_v49, %v2372_v48 }
 0x723   :  { %3535 = vmatprep.subr.bf16.mxu0 %v3534_v57  ;;  %v2374_v57 = vld [vmem:[%s5177_s18 + $0x150] sm:$0xff] }
 0x7d8   :  { %v1912_v51 = vpop.f32.mrb[20].mxu0 }
 0x7d9   :  { %2046 = vmatmul.mubr.f32.vlgmr.msra.gmra.mrb[18].mxu0 %v1912_v51  ;;  %2117 = vmatmul.mubr.f32.vlgmr.msra.gmra.mrb[12].mxu1 %v1912_v51  ;;  %v3109_v43 = vpop.f32.mrb[21].mxu0  ;;  %v2358_v51 = vld [vmem:[%s5177_s18 + $0xd0] sm:$0xff] }
 0x7da   :  { %3505 = vmatpush3.bf16.msra.mxu1 %v3504_v58  ;;  %3537 = vmatpush3.bf16.msra.mxu0 %v3536_v61  ;;  %v2359_v43 = vld [vmem:[%s5177_s18 + $0xd8] sm:$0xff]  ;;  %v2361_v61 = vld [vmem:[%s5177_s18 + $0xe8] sm:$0xff] }
 0x7db   :  { %3507 = vmatprep.subr.bf16.mxu1 %v3506_v2  ;;  %3539 = vmatprep.subr.bf16.mxu0 %v3538_v6  ;;  %v3522_v52 = vpack.c.bf16 %v2359_v43, %v2358_v51  ;;  %v2375_v58 = vld [vmem:[%s5177_s18 + $0x158] sm:$0xff]  ;;  %v3526_v1 = vpack.c.bf16 %v2361_v61, %v2360_v59  ;;  %v3558_v2 = vpack.c.bf16 %v2393_v0, %v2392_v63 }
 0x7dc   :  { %v3556_v60 = vpack.c.bf16 %v2375_v58, %v2374_v57  ;;  %v3528_v6 = vpack.c.bf16 %v2345_v4, %v2344_v3 }
 0x7de   :  { %3509 = vmatpush3.bf16.msra.mxu1 %v3508_v8  ;;  %3541 = vmatpush3.bf16.msra.mxu0 %v3540_v13  ;;  %v2377_v8 = vld [vmem:[%s5177_s18 + $0x168] sm:$0xff] }
 0x7df   :  { %3511 = vmatprep.subr.bf16.mxu1 %v3510_v17  ;;  %3543 = vmatprep.subr.bf16.mxu0 %v3542_v26  ;;  %v3560_v13 = vpack.c.bf16 %v2377_v8, %v2376_v5  ;;  %v2346_v17 = vld [vmem:[%s5177_s18 + $0x70] sm:$0xff]  ;;  %v2379_v26 = vld [vmem:[%s5177_s18 + $0x178] sm:$0xff] }
 0x7e0   :  { %v3564_v22 = vpack.c.bf16 %v2379_v26, %v2378_v20 }
 0x7e2   :  { %3513 = vmatpush3.bf16.msra.mxu1 %v3512_v21  ;;  %3545 = vmatpush3.bf16.msra.mxu0 %v3544_v24  ;;  %v3532_v21 = vpack.c.bf16 %v2347_v19, %v2346_v17  ;;  %v1531_v24 = vld [vmem:[%s5174_s15] sm:$0xf] }
 0x7e3   :  { %3515 = vmatprep.subr.bf16.mxu1 %v3514_v29  ;;  %3547 = vmatprep.subr.bf16.mxu0 %v3546_v36  ;;  %v1820_v28 = vrot.slane %v1531_v24, %v4171_v33  ;;  %v1828_v29 = vrot.slane %v1531_v24, %v5079_v23  ;;  %v1824_v32 = vrot.slane %v1531_v24, %v5085_v25 }
 0x7e4   :  { %v1832_v34 = vrot.slane %v1531_v24, %v5088_v62 }
 0x7e6   :  { %3517 = vmatpush3.bf16.msra.mxu1 %v3516_v37  ;;  %3549 = vmatpush3.bf16.msra.mxu0 %v3548_v40 }
 0x7e7   :  { %3519 = vmatprep.subr.bf16.mxu1 %v3518_v42  ;;  %3551 = vmatprep.subr.bf16.mxu0 %v3550_v9 }
 0x7ea   :  { %3521 = vmatpush3.bf16.msra.mxu1 %v3520_v10  ;;  %3553 = vmatpush3.bf16.msra.mxu0 %v3552_v50 }
 0x7eb   :  { %3523 = vmatprep.subr.bf16.mxu1 %v3522_v52  ;;  %3555 = vmatprep.subr.bf16.mxu0 %v3554_v55 }
 0x7ee   :  { %3525 = vmatpush3.bf16.msra.mxu1 %v3524_v56  ;;  %3557 = vmatpush3.bf16.msra.mxu0 %v3556_v60 }
 0x7ef   :  { %3527 = vmatprep.subr.bf16.mxu1 %v3526_v1  ;;  %3559 = vmatprep.subr.bf16.mxu0 %v3558_v2 }
 0x7f2   :  { %3529 = vmatpush3.bf16.msra.mxu1 %v3528_v6  ;;  %3561 = vmatpush3.bf16.msra.mxu0 %v3560_v13 }
 0x7f3   :  { %3531 = vmatprep.subr.bf16.mxu1 %v3530_v14  ;;  %3563 = vmatprep.subr.bf16.mxu0 %v3562_v18 }
 0x7f6   :  { %3533 = vmatpush3.bf16.msra.mxu1 %v3532_v21  ;;  %3565 = vmatpush3.bf16.msra.mxu0 %v3564_v22 }
 0x8ac   :  { %v2047_v35 = vpop.f32.mrb[18].mxu0  ;;  %v2118_v36 = vpop.f32.mrb[12].mxu1 }
 0x8ad   :  { %v3566_v37 = vadd.f32 %v2047_v35, %v1820_v28  ;;  %v3568_v38 = vadd.f32 %v2118_v36, %v1828_v29  ;;  %v2049_v39 = vpop.f32.mrb[19].mxu0  ;;  %v2120_v40 = vpop.f32.mrb[13].mxu1 }
 0x8ae   :  { %v3567_v41 = vadd.f32 %v2049_v39, %v1824_v32  ;;  %v3569_v27 = vadd.f32 %v2120_v40, %v1832_v34 }
 0x8af   :  { %v5094_v30 = vmax.f32 %v3566_v37, 0.0  ;;  %v5096_v42 = vmax.f32 %v3568_v38, 0.0 }
 0x8b0   :  { %v5098_v44 = vmax.f32 %v3567_v41, 0.0  ;;  %v5100_v46 = vmax.f32 %v3569_v27, 0.0 }
 0x8b1   :  { %v2132_v47 = vsel %vm2131_vm9, %v5094_v30, 0.0  ;;  %v2164_v9 = vmul.f32 %v5094_v30, %v5094_v30  ;;  %v2146_v10 = vsel %vm2131_vm9, %v5096_v42, 0.0  ;;  %v2166_v48 = vmul.f32 %v5096_v42, %v5096_v42 }
 0x8b2   :  { %v2133_v49 = vrot.slane %v2132_v47, 4  ;;  %v2147_v50 = vrot.slane %v2146_v10, 4  ;;  %v2139_v51 = vsel %vm2131_vm9, %v5098_v44, 0.0  ;;  %v2165_v43 = vmul.f32 %v5098_v44, %v5098_v44 }
 0x8b3   :  { %v2168_v45 = vsel %vm2131_vm9, %v2164_v9, 0.0  ;;  %v2182_v52 = vsel %vm2131_vm9, %v2166_v48, 0.0  ;;  %v2140_v7 = vrot.slane %v2139_v51, 4  ;;  %v2153_v53 = vsel %vm2131_vm9, %v5100_v46, 0.0 }
 0x8b4   :  { %v2134_v54 = vadd.f32 %v2133_v49, %v2132_v47  ;;  %v2169_v55 = vrot.slane %v2168_v45, 4  ;;  %v2148_v56 = vadd.f32 %v2147_v50, %v2146_v10  ;;  %v2183_v57 = vrot.slane %v2182_v52, 4 }
 0x8b5   :  { %v2141_v58 = vadd.f32 %v2140_v7, %v2139_v51  ;;  %v2175_v59 = vsel %vm2131_vm9, %v2165_v43, 0.0  ;;  %v2154_v60 = vrot.slane %v2153_v53, 4  ;;  %v2167_v61 = vmul.f32 %v5100_v46, %v5100_v46 }
 0x8b6   :  { %v2135_v63 = vrot.slane %v2134_v54, 2  ;;  %v2170_v0 = vadd.f32 %v2169_v55, %v2168_v45  ;;  %v2149_v1 = vrot.slane %v2148_v56, 2  ;;  %v2184_v2 = vadd.f32 %v2183_v57, %v2182_v52 }
 0x8b7   :  { %v2142_v3 = vrot.slane %v2141_v58, 2  ;;  %v2176_v4 = vrot.slane %v2175_v59, 4  ;;  %v2155_v5 = vadd.f32 %v2154_v60, %v2153_v53  ;;  %v2189_v6 = vsel %vm2131_vm9, %v2167_v61, 0.0 }
 0x8b8   :  { %v2136_v8 = vadd.f32 %v2135_v63, %v2134_v54  ;;  %v2171_v11 = vrot.slane %v2170_v0, 2  ;;  %v2150_v12 = vadd.f32 %v2149_v1, %v2148_v56  ;;  %v2185_v13 = vrot.slane %v2184_v2, 2 }
 0x8b9   :  { %v2143_v14 = vadd.f32 %v2142_v3, %v2141_v58  ;;  %v2177_v15 = vadd.f32 %v2176_v4, %v2175_v59  ;;  %v2156_v16 = vrot.slane %v2155_v5, 2  ;;  %v2190_v17 = vrot.slane %v2189_v6, 4 }
 0x8ba   :  { %v2137_v18 = vrot.slane %v2136_v8, 1  ;;  %v2172_v19 = vadd.f32 %v2171_v11, %v2170_v0  ;;  %v2151_v20 = vrot.slane %v2150_v12, 1  ;;  %v2186_v26 = vadd.f32 %v2185_v13, %v2184_v2 }
 0x8bb   :  { %v2144_v21 = vrot.slane %v2143_v14, 1  ;;  %v2178_v22 = vrot.slane %v2177_v15, 2  ;;  %v2157_v24 = vadd.f32 %v2156_v16, %v2155_v5  ;;  %v2191_v28 = vadd.f32 %v2190_v17, %v2189_v6 }
 0x8bc   :  { %v2138_v29 = vadd.f32 %v2137_v18, %v2136_v8  ;;  %v2173_v32 = vrot.slane %v2172_v19, 1  ;;  %v2152_v34 = vadd.f32 %v2151_v20, %v2150_v12  ;;  %v2187_v35 = vrot.slane %v2186_v26, 1  ;;  %v2200_v20 = vld [vmem:[%s5175_s16] sm:$0xf] }
 0x8bd   :  { %v2145_v36 = vadd.f32 %v2144_v21, %v2143_v14  ;;  %v2179_v37 = vadd.f32 %v2178_v22, %v2177_v15  ;;  %v2158_v38 = vrot.slane %v2157_v24, 1  ;;  %v2192_v39 = vrot.slane %v2191_v28, 2 }
 0x8be   :  { %v2160_v40 = vmul.f32 0.5, %v2138_v29  ;;  %v2174_v41 = vadd.f32 %v2173_v32, %v2172_v19  ;;  %v2162_v27 = vmul.f32 0.5, %v2152_v34  ;;  %v2188_v47 = vadd.f32 %v2187_v35, %v2186_v26 }
 0x8bf   :  { %v2161_v9 = vmul.f32 0.5, %v2145_v36  ;;  %v2180_v10 = vrot.slane %v2179_v37, 1  ;;  %v2159_v48 = vadd.f32 %v2158_v38, %v2157_v24  ;;  %v2193_v49 = vadd.f32 %v2192_v39, %v2191_v28 }
 0x8c0   :  { %v2196_v50 = vmul.f32 0.5, %v2174_v41  ;;  %v2201_v51 = vmul.f32 %v2160_v40, %v2160_v40  ;;  %v2198_v43 = vmul.f32 0.5, %v2188_v47  ;;  %v2203_v45 = vmul.f32 %v2162_v27, %v2162_v27 }
 0x8c1   :  { %v2181_v52 = vadd.f32 %v2180_v10, %v2179_v37  ;;  %v2202_v7 = vmul.f32 %v2161_v9, %v2161_v9  ;;  %v2163_v53 = vmul.f32 0.5, %v2159_v48  ;;  %v2194_v54 = vrot.slane %v2193_v49, 1 }
 0x8c2   :  { %v2205_v55 = vsub.f32 %v2196_v50, %v2201_v51  ;;  %v2207_v56 = vsub.f32 %v2198_v43, %v2203_v45  ;;  %v3648_v4 = vmov 1966171168   ;;  %v2272_v50 = vld [vmem:[%s5176_s17] sm:$0xf] }
 0x8c3   :  { %v2197_v57 = vmul.f32 0.5, %v2181_v52  ;;  %v2195_v58 = vadd.f32 %v2194_v54, %v2193_v49  ;;  %v2204_v59 = vmul.f32 %v2163_v53, %v2163_v53  ;;  %v2224_v5 = vunpack.c.l.s4 %v3648_v4 }
 0x8c4   :  { %v2209_v60 = vadd.f32 1e-05, %v2205_v55  ;;  %v2211_v61 = vadd.f32 1e-05, %v2207_v56 }
 0x8c5   :  { %v2206_v63 = vsub.f32 %v2197_v57, %v2202_v7  ;;  %v2199_v0 = vmul.f32 0.5, %v2195_v58  ;;  %v2225_v6 = vunpack.c.0.s8 %v2224_v5 }
 0x8c6   :  { %3608 = vrsqrt.f32 %v2209_v60 }
 0x8c7   :  { %v2210_v1 = vadd.f32 1e-05, %v2206_v63  ;;  %v2208_v2 = vsub.f32 %v2199_v0, %v2204_v59  ;;  %3610 = vrsqrt.f32 %v2211_v61  ;;  %v2228_v12 = vsub.s32 %v2225_v6, %v4165_v31 }
 0x8c9   :  { %3612 = vrsqrt.f32 %v2210_v1  ;;  %v2212_v3 = vadd.f32 1e-05, %v2208_v2 }
 0x8cb   :  { %3614 = vrsqrt.f32 %v2212_v3 }
 0x8d0   :  { %v3609_v8 = vpop.eup %3608 }
 0x8d1   :  { %v3611_v11 = vpop.eup %3610 }
 0x8d3   :  { %v3613_v13 = vpop.eup %3612 }
 0x8d4   :  { %v2221_v14 = vcombine.low %v3609_v8, %v3613_v13 }
 0x8d5   :  { %v3615_v15 = vpop.eup %3614 }
 0x8d6   :  { %v2222_v16 = vcombine.low %v3611_v11, %v3615_v15  ;;  %v2229_v17 = vrot.slane %v2221_v14, %v2228_v12 }
 0x8d8   :  { %v2236_v18 = vrot.slane %v2222_v16, %v2228_v12 }
 0x8da   :  { %v2237_v19 = vcombine.low %v2229_v17, %v2236_v18 }
 0x8dc   :  { %v2244_v26 = vrot.slane %v2237_v19, %v2228_v12 }
 0x8de   :  { %v2246_v21 = vmul.f32 %v2244_v26, %v2200_v20 }
 0x8e0   :  { %v2259_v22 = vrot.slane %v2246_v21, %v5079_v23  ;;  %v2263_v24 = vrot.slane %v2246_v21, %v5088_v62  ;;  %v2251_v28 = vrot.slane %v2246_v21, %v4171_v33  ;;  %v2255_v31 = vrot.slane %v2246_v21, %v5085_v25 }
 0x8e2   :  { %v2271_v29 = vmul.f32 %v2263_v24, %v5100_v46  ;;  %v2275_v32 = vmul.f32 %v2259_v22, %v2162_v27  ;;  %v2276_v34 = vmul.f32 %v2263_v24, %v2163_v53  ;;  %v2269_v35 = vmul.f32 %v2255_v31, %v5098_v44 }
 0x8e3   :  { %v2273_v36 = vmul.f32 %v2251_v28, %v2160_v40  ;;  %v2274_v37 = vmul.f32 %v2255_v31, %v2161_v9  ;;  %v2268_v38 = vmul.f32 %v2251_v28, %v5094_v30  ;;  %v2270_v39 = vmul.f32 %v2259_v22, %v5096_v42 }
 0x8e4   :  { %v2282_v41 = vcombine.low %v2275_v32, %v2276_v34 }
 0x8e5   :  { %v2281_v47 = vcombine.low %v2273_v36, %v2274_v37 }
 0x8e6   :  { %v2296_v10 = vrot.slane %v2282_v41, %v2228_v12 }
 0x8e7   :  { %v2289_v48 = vrot.slane %v2281_v47, %v2228_v12 }
 0x8e9   :  { %v2297_v49 = vcombine.low %v2289_v48, %v2296_v10 }
 0x8eb   :  { %v2304_v46 = vrot.slane %v2297_v49, %v2228_v12 }
 0x8ed   :  { %v2306_v27 = vsub.f32 %v2272_v50, %v2304_v46 }
 0x8ef   :  { %v2315_v51 = vrot.slane %v2306_v27, %v5085_v25  ;;  %v2323_v44 = vrot.slane %v2306_v27, %v5088_v62  ;;  %v2311_v40 = vrot.slane %v2306_v27, %v4171_v33  ;;  %v2319_v30 = vrot.slane %v2306_v27, %v5079_v23  ;;  %v2763_v25 = vld [vmem:[%s5178_s19] ss:$0 sm:$0xff]  ;;  %s3649_s19 = smov [#allocation3]  }
 0x8f0   :  { %s2565_s6 = sshll.u32 %s3649_s19, 4  ;;  %s2566_s6 = int_to_ptr.vmem [resolvable:$true] %s2565_s6 }
 0x8f1   :  { %v2329_v42 = vadd.f32 %v2315_v51, %v2269_v35  ;;  %v2331_v9 = vadd.f32 %v2323_v44, %v2271_v29  ;;  %v2328_v43 = vadd.f32 %v2311_v40, %v2268_v38  ;;  %v2330_v45 = vadd.f32 %v2319_v30, %v2270_v39  ;;  %s3620_s13 = scalar_lea.vmem %s2566_s6, 32  ;;  %p3625_p1 = scmp.lt.s32.totalorder %s2566_s6, %s2566_s6 }
 0x8f2   :  { %p3621_p0 = scmp.ne.s32.totalorder %s2566_s6, %s3620_s13  ;;  %p3626_p2 = scmp.lt.s32.totalorder %s3620_s13, %s3620_s13 }
 0x8f3   :  { %2467 = vmatprep.mubr.f32.mxu1 %v2329_v42  ;;  %2537 = vmatprep.mubr.f32.mxu0 %v2331_v9 }
 0x8f4   :  { %2468 = vmatmul.mubr.f32.vlgmr.msra.gmra.mrb[14].mxu1 %v2328_v43  ;;  %2538 = vmatmul.mubr.f32.vlgmr.msra.gmra.mrb[22].mxu0 %v2330_v45  ;;  %p3627_p3 = por %p3626_p2, %p3625_p1 }
 0x8f6   :  { %p3628_p4 = pnand %p3627_p3, %p3621_p0 }
 0x9c7   :  { %v2886_v52 = vpop.f32.mrb[14].mxu1  ;;  %v2921_v7 = vpop.f32.mrb[22].mxu0 }
 0x9c8   :  { %v2887_v53 = vpop.f32.mrb[15].mxu1  ;;  %v2922_v62 = vpop.f32.mrb[23].mxu0 }
 0x9c9   :  { %v2888_v54 = vadd.f32 %v2887_v53, %v2886_v52  ;;  %v2923_v33 = vadd.f32 %v2922_v62, %v2921_v7 }
 0x9cb   :  { %v2470_v55 = vadd.f32 %v2888_v54, %v2763_v25 }
 0x9cd   :  { %v2540_v23 = vadd.f32 %v2923_v33, %v2470_v55 }
 0x9cf   :  { %v2544_v56 = vsel %vm2543_vm10, %v2540_v23, -inf }
 0x9d0   :  { %2545 = vmax.xlane.f32.xlu0 %v2544_v56 }
 0xa5d   :  { %v2546_v57 = vpop.xlane.xlu0 %2545 }
 0xa5e   :  { %v2547_v58 = vsub.f32 %v2540_v23, %v2546_v57 }
 0xa60   :  { %v2548_v59 = vmul.f32 1.442695, %v2547_v58 }
 0xa62   :  { %3616 = vpow2.f32 %v2548_v59 }
 0xa6c   :  { %v3617_v60 = vpop.eup %3616 }
 0xa6d   :  { %v2550_v61 = vsel %vm2543_vm10, %v3617_v60, 0.0 }
 0xa6e   :  { %2551 = vadd.xlane.f32.xlu0 %v2550_v61 }
 0xafb   :  { %v2552_v63 = vpop.xlane.xlu0 %2551 }
 0xafc   :  { %3618 = vrcp.f32 %v2552_v63 }
 0xb06   :  { %v3619_v0 = vpop.eup %3618 }
 0xb07   :  { %v2554_v1 = vmul.f32 %v3619_v0, %v2552_v63 }
 0xb09   :  { %v2555_v2 = vsub.f32 2.0, %v2554_v1 }
 0xb0b   :  { %v2556_v3 = vmul.f32 %v3619_v0, %v2555_v2 }
 0xb0d   :  { %v2557_v4 = vmul.f32 %v3617_v60, %v2556_v3 }
 0xb0f   :  { %2558 = vst.msk [vmem:[#allocation3] sm:$0x3] %vm2543_vm10, %v2557_v4 }
 0xb10   :  { %3631 = shalt.err (!%p3628_p4)
}
 0xb11   :  { %s3632_s3 = scalar_lea.hbm %s5179_s20, 32 }
 0xb12   :  { %p3633_p5 = scmp.ne.s32.totalorder %s5179_s20, %s3632_s3  ;;  %p3636_p6 = scmp.lt.u32.totalorder %s3632_s3, %s5179_s20 }
 0xb14   :  { %p3638_p7 = pnand %p3636_p6, %p3633_p5 }
 0xb16   :  { %3641 = shalt.err (!%p3638_p7)
}
 0xb17   :  { %2568 = dma.vmem_to_hbm [thread:$0]  %s2566_s6, 32, %s5179_s20, [#allocation4]  }
 0xb18   :  { %3642 = dma.done.wait [#allocation4], 32  }
 0xb19   :  { %3643 = vsyncadd [#allocation4], 4294967264 }
 0xb1a   :  { %2572 = vsyncpa [#allocation4], 1 }

</bundles_post_ra>
